<compile_context>
chip_gen: v7x
topology: tpu7x:2x2x1
jax: 0.10.0
libtpu: 0.0.40
codegen_flags: <defaults>
</compile_context>

<pallas_src>
import numpy as np
import jax
import jax.numpy as jnp
from jax.experimental import pallas as pl
from jax.experimental.pallas import tpu as pltpu


def _head_pack_consts(N, H, C):
    """Constants for lane-packed per-head attention at graph size N.

    D [H, H*N]    : D[h, h*N + j] = 1        (dst broadcast / per-head block mask)
    P [H*N, N]    : P[h*N + j, j] = 1        (row replication of xw per head)
    S [H*N, H*C]  : S[h*N + j, h*C + c] = 1  (block-diag: segmented sum + expand)
    """
    D = np.zeros((H, H * N), np.float32)
    P = np.zeros((H * N, N), np.float32)
    S = np.zeros((H * N, H * C), np.float32)
    for h in range(H):
        D[h, h * N:(h + 1) * N] = 1.0
        for j in range(N):
            P[h * N + j, j] = 1.0
        S[h * N:(h + 1) * N, h * C:(h + 1) * C] = 1.0
    return D, P, S


def _make_fused_gat_kernel(layer_cfgs, negative_slope=0.2):
    """Whole GAT forward in one kernel body.

    layer_cfgs: tuple of (H, C, const_base, apply_relu, apply_log_softmax).
    Ref order: x, packed_mask, [W, A_dstD, A_src_blk, bias] per layer,
               unique [D, P, S] constant triples, out.
    """
    n_layers = len(layer_cfgs)

    def kernel(*refs):
        x_ref, mask_ref = refs[0], refs[1]
        out_ref = refs[-1]
        p_refs = refs[2:2 + 4 * n_layers]
        c_refs = refs[2 + 4 * n_layers:-1]

        N = x_ref.shape[0]
        mask_packed = mask_ref[...]                        # [N, Hmax*N], 0 / -1e30
        h = x_ref[...]                                     # [N, F_in]

        for li, (H, C, cbase, do_relu, do_logsm) in enumerate(layer_cfgs):
            W = p_refs[4 * li][...]                        # [F_in, H*C]
            A_dstD = p_refs[4 * li + 1][...]               # [H*C, H*N]
            A_src = p_refs[4 * li + 2][...]                # [H*C, H]
            bias = p_refs[4 * li + 3][...]                 # [1, H*C]

            # (1) one wide linear transform for all heads (single MXU matmul)
            xw = jnp.dot(h, W, preferred_element_type=jnp.float32)          # [N, H*C]

            # (2) attention logits, heads packed along lanes: col = head*N + src
            #     dst part: projection fused with the dst broadcast (host-built).
            dst_b = jnp.dot(xw, A_dstD, preferred_element_type=jnp.float32)  # [N, H*N]
            a_src = jnp.dot(xw, A_src, preferred_element_type=jnp.float32)   # [N, H]
            a_srcT = jnp.transpose(a_src)                                    # [H, N] (one XLU transpose / layer)
            if H == 1:
                src_row = a_srcT                                             # [1, N]
            else:
                D = c_refs[cbase][...]                                       # [H, H*N]
                # lane-replicate a_srcT into the packed layout via the MXU,
                # keep only each head's own block, collapse sublanes once.
                tiled = jnp.einsum('hn,mn->hm', a_srcT, D * 0.0 + 0.0, # placeholder never used
                                   preferred_element_type=jnp.float32) if False else None
                del tiled
                P = c_refs[cbase + 1][...]                                   # [H*N, N]
                rep = jnp.einsum('hn,mn->hm', a_srcT, P,
                                 preferred_element_type=jnp.float32)         # [H, H*N]
                src_row = jnp.sum(rep * D, axis=0, keepdims=True)            # [1, H*N]

            scores = dst_b + src_row                                         # [N, H*N]
            scores = jnp.where(scores > 0, scores, negative_slope * scores)  # LeakyReLU(0.2)
            scores = scores + mask_packed[:, :H * N]                         # mask non-edges

            # (3) softmax per head: one shared row-wide max is valid because the
            #     common exp(m_head - m_row) factor cancels in agg / denom below.
            m = jnp.max(scores, axis=-1, keepdims=True)                      # [N, 1]
            e = jnp.exp(scores - m)                                          # [N, H*N] lane-dense EUP

            # (4) aggregation + per-head normalisation, all lane-dense
            if H == 1:
                agg = jnp.dot(e, xw, preferred_element_type=jnp.float32)     # [N, C]
                den = jnp.sum(e, axis=-1, keepdims=True)                     # [N, 1]
            else:
                P = c_refs[cbase + 1][...]                                   # [H*N, N]
                S = c_refs[cbase + 2][...]                                   # [H*N, H*C]
                V = jnp.dot(P, xw, preferred_element_type=jnp.float32) * S   # [H*N, H*C] block-diag
                agg = jnp.dot(e, V, preferred_element_type=jnp.float32)      # [N, H*C]
                den = jnp.dot(e, S, preferred_element_type=jnp.float32)      # [N, H*C] denom, expanded

            # one wide normalise + bias (single EUP reciprocal, single VPU pass)
            h = agg * pl.reciprocal(den, approx=True) + bias                 # [N, H*C]

            if do_relu:
                h = jnp.maximum(h, 0.0)
            if do_logsm:
                mo = jnp.max(h, axis=-1, keepdims=True)
                lse = jnp.log(jnp.sum(jnp.exp(h - mo), axis=-1, keepdims=True)) + mo
                h = h - lse

        out_ref[...] = h

    return kernel


def gat_forward(x, adj, params_list, heads):
    """Full GAT forward (eval mode: dropout = identity). One pallas_call."""
    N = x.shape[0]
    n_layers = len(params_list)
    hmax = max(int(heads), 1)

    # Host-side packing: additive mask built once, pre-tiled to the packed layout.
    neg_mask = jnp.where(adj > 0, jnp.float32(0.0), jnp.float32(-1e30))      # [N, N]
    mask_packed = jnp.tile(neg_mask, (1, hmax))                              # [N, hmax*N]

    layer_cfgs = []
    param_arrays = []
    const_arrays = []
    const_map = {}

    for li, (W, a_s, a_d, b) in enumerate(params_list):
        last = li == n_layers - 1
        H = 1 if last else heads
        C = int(b.size) // H

        a_s_np = np.asarray(a_s, np.float32)
        a_d_np = np.asarray(a_d, np.float32)
        A_src_blk = np.zeros((H * C, H), np.float32)
        A_dst_blk = np.zeros((H * C, H), np.float32)
        for hh in range(H):
            A_src_blk[hh * C:(hh + 1) * C, hh] = a_s_np[hh * C:(hh + 1) * C]
            A_dst_blk[hh * C:(hh + 1) * C, hh] = a_d_np[hh * C:(hh + 1) * C]

        D_np, P_np, S_np = _head_pack_consts(N, H, C)
        A_dstD = A_dst_blk @ D_np                                            # [H*C, H*N]

        cbase = -1
        if H > 1:
            key = (H, C)
            if key not in const_map:
                const_map[key] = len(const_arrays)
                const_arrays += [jnp.asarray(D_np), jnp.asarray(P_np), jnp.asarray(S_np)]
            cbase = const_map[key]

        layer_cfgs.append((H, C, cbase, not last, last))
        param_arrays += [
            jnp.asarray(W, jnp.float32),
            jnp.asarray(A_dstD, jnp.float32),
            jnp.asarray(A_src_blk, jnp.float32),
            jnp.asarray(b, jnp.float32).reshape(1, H * C),
        ]

    out_channels = layer_cfgs[-1][1]
    kernel = _make_fused_gat_kernel(tuple(layer_cfgs))

    flat_inputs = [x, mask_packed] + param_arrays + const_arrays
    in_specs = [pl.BlockSpec(a.shape, lambda i: (0, 0)) for a in flat_inputs]

    return pl.pallas_call(
        kernel,
        out_shape=jax.ShapeDtypeStruct((N, out_channels), jnp.float32),
        grid=(1,),
        in_specs=in_specs,
        out_specs=pl.BlockSpec((N, out_channels), lambda i: (0, 0)),
        compiler_params=pltpu.CompilerParams(
            dimension_semantics=("arbitrary",)),
    )(*flat_inputs)


def gat_reference(x, adj, params_list, heads, negative_slope=0.2):
    """Pure-JAX reference (eval mode), highest matmul precision."""
    hp = jax.lax.Precision.HIGHEST
    neg = jnp.where(adj > 0, jnp.float32(0.0), jnp.float32(-1e30))
    h = x
    n_layers = len(params_list)
    for li, (W, a_s, a_d, b) in enumerate(params_list):
        last = li == n_layers - 1
        H = 1 if last else heads
        C = int(b.size) // H
        xw = jnp.dot(h, W, precision=hp)
        outs = []
        for hh in range(H):
            sl = slice(hh * C, (hh + 1) * C)
            xw_h = xw[:, sl]
            a_src = jnp.dot(xw_h, a_s[sl], precision=hp)
            a_dst = jnp.dot(xw_h, a_d[sl], precision=hp)
            sc = a_dst[:, None] + a_src[None, :]
            sc = jnp.where(sc > 0, sc, negative_slope * sc) + neg
            alpha = jax.nn.softmax(sc, axis=-1)
            outs.append(jnp.dot(alpha, xw_h, precision=hp) + b[sl])
        h = jnp.concatenate(outs, axis=-1)
        h = jax.nn.relu(h) if not last else jax.nn.log_softmax(h, axis=-1)
    return h


def _glorot(key, shape, fan_in, fan_out):
    limit = (6.0 / (fan_in + fan_out)) ** 0.5
    return jax.random.uniform(key, shape, jnp.float32, -limit, limit)


if __name__ == "__main__":
    key = jax.random.PRNGKey(0)
    k_x, k_src, k_dst, k_params = jax.random.split(key, 4)

    # Small, module-consistent shapes.
    N = 16                 # number of graph nodes
    in_channels = 16
    hidden_channels = 8
    out_channels = 8       # num classes
    num_layers = 3
    heads = 8
    E = 40                 # number of directed edges

    # Node features and edge_index [2, E] (row 0 = src, row 1 = dst).
    x = jax.random.normal(k_x, (N, in_channels), jnp.float32)
    src = jax.random.randint(k_src, (E,), 0, N)
    dst = jax.random.randint(k_dst, (E,), 0, N)
    edge_index = jnp.stack([src, dst])

    # Dense adjacency mask adj[dst, src] + self loops (GATConv default); the
    # self loops also guarantee every softmax row has a valid entry.
    adj = jnp.zeros((N, N), jnp.float32)
    adj = adj.at[edge_index[1], edge_index[0]].set(1.0)
    adj = adj.at[jnp.arange(N), jnp.arange(N)].set(1.0)

    # Deterministic parameter init (glorot weights/attention, zero bias).
    layer_dims = [(in_channels, hidden_channels, heads)]
    for _ in range(num_layers - 2):
        layer_dims.append((hidden_channels * heads, hidden_channels, heads))
    layer_dims.append((hidden_channels * heads, out_channels, 1))

    pkeys = iter(jax.random.split(k_params, 3 * num_layers))
    params_list = []
    for f_in, c, H in layer_dims:
        W = _glorot(next(pkeys), (f_in, H * c), f_in, H * c)
        a_s = _glorot(next(pkeys), (H * c,), c, 1)
        a_d = _glorot(next(pkeys), (H * c,), c, 1)
        b = jnp.zeros((H * c,), jnp.float32)
        params_list.append((W, a_s, a_d, b))

    out = gat_forward(x, adj, params_list, heads)
    out = jax.block_until_ready(out)

    assert out.shape == (N, out_channels), out.shape
    # rows of log_softmax output must exp-sum to ~1
    assert bool(jnp.all(jnp.abs(jnp.sum(jnp.exp(out), axis=1) - 1.0) < 1e-3))
    # compare against the pure-JAX reference (tolerance absorbs the approximate
    # EUP reciprocal used on the softmax denominators and matmul rounding)
    ref = gat_reference(x, adj, params_list, heads)
    max_err = float(jnp.max(jnp.abs(out - ref)))
    assert max_err < 5e-2, max_err
    print("KERNEL_OK")
</pallas_src>

<mosaic_0001>
module attributes {stable_mosaic.version = 11 : i64} {
  func.func @kernel(%arg0: i32, %arg1: memref<16x16xf32, #tpu.memory_space<vmem>>, %arg2: memref<16x128xf32, #tpu.memory_space<vmem>>, %arg3: memref<16x64xf32, #tpu.memory_space<vmem>>, %arg4: memref<64x128xf32, #tpu.memory_space<vmem>>, %arg5: memref<64x8xf32, #tpu.memory_space<vmem>>, %arg6: memref<1x64xf32, #tpu.memory_space<vmem>>, %arg7: memref<64x64xf32, #tpu.memory_space<vmem>>, %arg8: memref<64x128xf32, #tpu.memory_space<vmem>>, %arg9: memref<64x8xf32, #tpu.memory_space<vmem>>, %arg10: memref<1x64xf32, #tpu.memory_space<vmem>>, %arg11: memref<64x8xf32, #tpu.memory_space<vmem>>, %arg12: memref<8x16xf32, #tpu.memory_space<vmem>>, %arg13: memref<8x1xf32, #tpu.memory_space<vmem>>, %arg14: memref<1x8xf32, #tpu.memory_space<vmem>>, %arg15: memref<8x128xf32, #tpu.memory_space<vmem>>, %arg16: memref<128x16xf32, #tpu.memory_space<vmem>>, %arg17: memref<128x64xf32, #tpu.memory_space<vmem>>, %arg18: memref<16x8xf32, #tpu.memory_space<vmem>>) attributes {dimension_semantics = [#tpu.dimension_semantics<arbitrary>], iteration_bounds = array<i64: 1>, scalar_prefetch = 0 : i64, scratch_operands = 0 : i64, tpu.core_type = #tpu.core_type<tc>, window_params = [{pipeline_mode = #tpu.pipeline_mode<synchronous>, transform_indices = @transform_0, window_bounds = array<i64: 16, 16>}, {pipeline_mode = #tpu.pipeline_mode<synchronous>, transform_indices = @transform_1, window_bounds = array<i64: 16, 128>}, {pipeline_mode = #tpu.pipeline_mode<synchronous>, transform_indices = @transform_2, window_bounds = array<i64: 16, 64>}, {pipeline_mode = #tpu.pipeline_mode<synchronous>, transform_indices = @transform_3, window_bounds = array<i64: 64, 128>}, {pipeline_mode = #tpu.pipeline_mode<synchronous>, transform_indices = @transform_4, window_bounds = array<i64: 64, 8>}, {pipeline_mode = #tpu.pipeline_mode<synchronous>, transform_indices = @transform_5, window_bounds = array<i64: 1, 64>}, {pipeline_mode = #tpu.pipeline_mode<synchronous>, transform_indices = @transform_6, window_bounds = array<i64: 64, 64>}, {pipeline_mode = #tpu.pipeline_mode<synchronous>, transform_indices = @transform_7, window_bounds = array<i64: 64, 128>}, {pipeline_mode = #tpu.pipeline_mode<synchronous>, transform_indices = @transform_8, window_bounds = array<i64: 64, 8>}, {pipeline_mode = #tpu.pipeline_mode<synchronous>, transform_indices = @transform_9, window_bounds = array<i64: 1, 64>}, {pipeline_mode = #tpu.pipeline_mode<synchronous>, transform_indices = @transform_10, window_bounds = array<i64: 64, 8>}, {pipeline_mode = #tpu.pipeline_mode<synchronous>, transform_indices = @transform_11, window_bounds = array<i64: 8, 16>}, {pipeline_mode = #tpu.pipeline_mode<synchronous>, transform_indices = @transform_12, window_bounds = array<i64: 8, 1>}, {pipeline_mode = #tpu.pipeline_mode<synchronous>, transform_indices = @transform_13, window_bounds = array<i64: 1, 8>}, {pipeline_mode = #tpu.pipeline_mode<synchronous>, transform_indices = @transform_14, window_bounds = array<i64: 8, 128>}, {pipeline_mode = #tpu.pipeline_mode<synchronous>, transform_indices = @transform_15, window_bounds = array<i64: 128, 16>}, {pipeline_mode = #tpu.pipeline_mode<synchronous>, transform_indices = @transform_16, window_bounds = array<i64: 128, 64>}, {pipeline_mode = #tpu.pipeline_mode<synchronous>, transform_indices = @transform_17, window_bounds = array<i64: 16, 8>}]} {
    %c0 = arith.constant 0 : index
    %c0_0 = arith.constant 0 : index
    %0 = vector.load %arg2[%c0, %c0_0] : memref<16x128xf32, #tpu.memory_space<vmem>>, vector<16x128xf32>
    %c0_1 = arith.constant 0 : index
    %c0_2 = arith.constant 0 : index
    %1 = vector.load %arg1[%c0_1, %c0_2] : memref<16x16xf32, #tpu.memory_space<vmem>>, vector<16x16xf32>
    %c0_3 = arith.constant 0 : index
    %c0_4 = arith.constant 0 : index
    %2 = vector.load %arg3[%c0_3, %c0_4] : memref<16x64xf32, #tpu.memory_space<vmem>>, vector<16x64xf32>
    %c0_5 = arith.constant 0 : index
    %c0_6 = arith.constant 0 : index
    %3 = vector.load %arg4[%c0_5, %c0_6] : memref<64x128xf32, #tpu.memory_space<vmem>>, vector<64x128xf32>
    %c0_7 = arith.constant 0 : index
    %c0_8 = arith.constant 0 : index
    %4 = vector.load %arg5[%c0_7, %c0_8] : memref<64x8xf32, #tpu.memory_space<vmem>>, vector<64x8xf32>
    %c0_9 = arith.constant 0 : index
    %c0_10 = arith.constant 0 : index
    %5 = vector.load %arg6[%c0_9, %c0_10] : memref<1x64xf32, #tpu.memory_space<vmem>>, vector<1x64xf32>
    %cst = arith.constant dense<0.000000e+00> : vector<16x64xf32>
    %6 = tpu.matmul %1, %2, %cst {dimension_numbers = #tpu.dot_dimension_numbers<[1], [0], [0], [1], [0, 0, 1, 1], [], []>} : vector<16x16xf32>, vector<16x64xf32>, vector<16x64xf32> -> vector<16x64xf32>
    %cst_11 = arith.constant dense<0.000000e+00> : vector<16x128xf32>
    %7 = tpu.matmul %6, %3, %cst_11 {dimension_numbers = #tpu.dot_dimension_numbers<[1], [0], [0], [1], [0, 0, 1, 1], [], []>} : vector<16x64xf32>, vector<64x128xf32>, vector<16x128xf32> -> vector<16x128xf32>
    %cst_12 = arith.constant dense<0.000000e+00> : vector<16x8xf32>
    %8 = tpu.matmul %6, %4, %cst_12 {dimension_numbers = #tpu.dot_dimension_numbers<[1], [0], [0], [1], [0, 0, 1, 1], [], []>} : vector<16x64xf32>, vector<64x8xf32>, vector<16x8xf32> -> vector<16x8xf32>
    %9 = tpu.transpose %8, [1, 0] : vector<16x8xf32> -> vector<8x16xf32>
    %c0_13 = arith.constant 0 : index
    %c0_14 = arith.constant 0 : index
    %10 = vector.load %arg15[%c0_13, %c0_14] : memref<8x128xf32, #tpu.memory_space<vmem>>, vector<8x128xf32>
    %c0_15 = arith.constant 0 : index
    %c0_16 = arith.constant 0 : index
    %11 = vector.load %arg16[%c0_15, %c0_16] : memref<128x16xf32, #tpu.memory_space<vmem>>, vector<128x16xf32>
    "tpu.trace_start"() <{level = 10 : i32, message = "hn,mn->hm"}> : () -> ()
    %cst_17 = arith.constant dense<0.000000e+00> : vector<8x128xf32>
    %12 = tpu.matmul %9, %11, %cst_17 {dimension_numbers = #tpu.dot_dimension_numbers<[1], [1], [0], [0], [0, 0, 1, 0], [], []>} : vector<8x16xf32>, vector<128x16xf32>, vector<8x128xf32> -> vector<8x128xf32>
    "tpu.trace_stop"() : () -> ()
    %13 = arith.mulf %12, %10 : vector<8x128xf32>
    %cst_18 = arith.constant dense<0.000000e+00> : vector<128xf32>
    %14 = vector.multi_reduction <add>, %13, %cst_18 [0] : vector<8x128xf32> to vector<128xf32>
    %15 = vector.shape_cast %14 : vector<128xf32> to vector<1x128xf32>
    %16 = vector.broadcast %15 : vector<1x128xf32> to vector<16x128xf32>
    %17 = arith.addf %7, %16 : vector<16x128xf32>
    %cst_19 = arith.constant 0.000000e+00 : f32
    %18 = vector.broadcast %cst_19 : f32 to vector<16x128xf32>
    %19 = arith.cmpf ogt, %17, %18 : vector<16x128xf32>
    %cst_20 = arith.constant 2.000000e-01 : f32
    %20 = vector.broadcast %cst_20 : f32 to vector<16x128xf32>
    %21 = arith.mulf %20, %17 : vector<16x128xf32>
    %22 = arith.select %19, %17, %21 : vector<16x128xi1>, vector<16x128xf32>
    %23 = arith.addf %22, %0 : vector<16x128xf32>
    %cst_21 = arith.constant dense<0xFF800000> : vector<16xf32>
    %24 = vector.multi_reduction <maximumf>, %23, %cst_21 [1] : vector<16x128xf32> to vector<16xf32>
    %25 = vector.shape_cast %24 : vector<16xf32> to vector<16x1xf32>
    %26 = vector.broadcast %25 : vector<16x1xf32> to vector<16x128xf32>
    %27 = arith.subf %23, %26 : vector<16x128xf32>
    %28 = math.exp %27 : vector<16x128xf32>
    %c0_22 = arith.constant 0 : index
    %c0_23 = arith.constant 0 : index
    %29 = vector.load %arg16[%c0_22, %c0_23] : memref<128x16xf32, #tpu.memory_space<vmem>>, vector<128x16xf32>
    %c0_24 = arith.constant 0 : index
    %c0_25 = arith.constant 0 : index
    %30 = vector.load %arg17[%c0_24, %c0_25] : memref<128x64xf32, #tpu.memory_space<vmem>>, vector<128x64xf32>
    %cst_26 = arith.constant dense<0.000000e+00> : vector<128x64xf32>
    %31 = tpu.matmul %29, %6, %cst_26 {dimension_numbers = #tpu.dot_dimension_numbers<[1], [0], [0], [1], [0, 0, 1, 1], [], []>} : vector<128x16xf32>, vector<16x64xf32>, vector<128x64xf32> -> vector<128x64xf32>
    %32 = arith.mulf %31, %30 : vector<128x64xf32>
    %cst_27 = arith.constant dense<0.000000e+00> : vector<16x64xf32>
    %33 = tpu.matmul %28, %32, %cst_27 {dimension_numbers = #tpu.dot_dimension_numbers<[1], [0], [0], [1], [0, 0, 1, 1], [], []>} : vector<16x128xf32>, vector<128x64xf32>, vector<16x64xf32> -> vector<16x64xf32>
    %cst_28 = arith.constant dense<0.000000e+00> : vector<16x64xf32>
    %34 = tpu.matmul %28, %30, %cst_28 {dimension_numbers = #tpu.dot_dimension_numbers<[1], [0], [0], [1], [0, 0, 1, 1], [], []>} : vector<16x128xf32>, vector<128x64xf32>, vector<16x64xf32> -> vector<16x64xf32>
    %35 = tpu.reciprocal %34 {approx = true} : vector<16x64xf32> -> vector<16x64xf32>
    %36 = arith.mulf %33, %35 : vector<16x64xf32>
    %37 = vector.broadcast %5 : vector<1x64xf32> to vector<16x64xf32>
    %38 = arith.addf %36, %37 : vector<16x64xf32>
    %cst_29 = arith.constant 0.000000e+00 : f32
    %39 = vector.broadcast %cst_29 : f32 to vector<16x64xf32>
    %40 = arith.maximumf %38, %39 : vector<16x64xf32>
    %c0_30 = arith.constant 0 : index
    %c0_31 = arith.constant 0 : index
    %41 = vector.load %arg7[%c0_30, %c0_31] : memref<64x64xf32, #tpu.memory_space<vmem>>, vector<64x64xf32>
    %c0_32 = arith.constant 0 : index
    %c0_33 = arith.constant 0 : index
    %42 = vector.load %arg8[%c0_32, %c0_33] : memref<64x128xf32, #tpu.memory_space<vmem>>, vector<64x128xf32>
    %c0_34 = arith.constant 0 : index
    %c0_35 = arith.constant 0 : index
    %43 = vector.load %arg9[%c0_34, %c0_35] : memref<64x8xf32, #tpu.memory_space<vmem>>, vector<64x8xf32>
    %c0_36 = arith.constant 0 : index
    %c0_37 = arith.constant 0 : index
    %44 = vector.load %arg10[%c0_36, %c0_37] : memref<1x64xf32, #tpu.memory_space<vmem>>, vector<1x64xf32>
    %cst_38 = arith.constant dense<0.000000e+00> : vector<16x64xf32>
    %45 = tpu.matmul %40, %41, %cst_38 {dimension_numbers = #tpu.dot_dimension_numbers<[1], [0], [0], [1], [0, 0, 1, 1], [], []>} : vector<16x64xf32>, vector<64x64xf32>, vector<16x64xf32> -> vector<16x64xf32>
    %cst_39 = arith.constant dense<0.000000e+00> : vector<16x128xf32>
    %46 = tpu.matmul %45, %42, %cst_39 {dimension_numbers = #tpu.dot_dimension_numbers<[1], [0], [0], [1], [0, 0, 1, 1], [], []>} : vector<16x64xf32>, vector<64x128xf32>, vector<16x128xf32> -> vector<16x128xf32>
    %cst_40 = arith.constant dense<0.000000e+00> : vector<16x8xf32>
    %47 = tpu.matmul %45, %43, %cst_40 {dimension_numbers = #tpu.dot_dimension_numbers<[1], [0], [0], [1], [0, 0, 1, 1], [], []>} : vector<16x64xf32>, vector<64x8xf32>, vector<16x8xf32> -> vector<16x8xf32>
    %48 = tpu.transpose %47, [1, 0] : vector<16x8xf32> -> vector<8x16xf32>
    %c0_41 = arith.constant 0 : index
    %c0_42 = arith.constant 0 : index
    %49 = vector.load %arg15[%c0_41, %c0_42] : memref<8x128xf32, #tpu.memory_space<vmem>>, vector<8x128xf32>
    %c0_43 = arith.constant 0 : index
    %c0_44 = arith.constant 0 : index
    %50 = vector.load %arg16[%c0_43, %c0_44] : memref<128x16xf32, #tpu.memory_space<vmem>>, vector<128x16xf32>
    "tpu.trace_start"() <{level = 10 : i32, message = "hn,mn->hm"}> : () -> ()
    %cst_45 = arith.constant dense<0.000000e+00> : vector<8x128xf32>
    %51 = tpu.matmul %48, %50, %cst_45 {dimension_numbers = #tpu.dot_dimension_numbers<[1], [1], [0], [0], [0, 0, 1, 0], [], []>} : vector<8x16xf32>, vector<128x16xf32>, vector<8x128xf32> -> vector<8x128xf32>
    "tpu.trace_stop"() : () -> ()
    %52 = arith.mulf %51, %49 : vector<8x128xf32>
    %cst_46 = arith.constant dense<0.000000e+00> : vector<128xf32>
    %53 = vector.multi_reduction <add>, %52, %cst_46 [0] : vector<8x128xf32> to vector<128xf32>
    %54 = vector.shape_cast %53 : vector<128xf32> to vector<1x128xf32>
    %55 = vector.broadcast %54 : vector<1x128xf32> to vector<16x128xf32>
    %56 = arith.addf %46, %55 : vector<16x128xf32>
    %cst_47 = arith.constant 0.000000e+00 : f32
    %57 = vector.broadcast %cst_47 : f32 to vector<16x128xf32>
    %58 = arith.cmpf ogt, %56, %57 : vector<16x128xf32>
    %cst_48 = arith.constant 2.000000e-01 : f32
    %59 = vector.broadcast %cst_48 : f32 to vector<16x128xf32>
    %60 = arith.mulf %59, %56 : vector<16x128xf32>
    %61 = arith.select %58, %56, %60 : vector<16x128xi1>, vector<16x128xf32>
    %62 = arith.addf %61, %0 : vector<16x128xf32>
    %cst_49 = arith.constant dense<0xFF800000> : vector<16xf32>
    %63 = vector.multi_reduction <maximumf>, %62, %cst_49 [1] : vector<16x128xf32> to vector<16xf32>
    %64 = vector.shape_cast %63 : vector<16xf32> to vector<16x1xf32>
    %65 = vector.broadcast %64 : vector<16x1xf32> to vector<16x128xf32>
    %66 = arith.subf %62, %65 : vector<16x128xf32>
    %67 = math.exp %66 : vector<16x128xf32>
    %c0_50 = arith.constant 0 : index
    %c0_51 = arith.constant 0 : index
    %68 = vector.load %arg16[%c0_50, %c0_51] : memref<128x16xf32, #tpu.memory_space<vmem>>, vector<128x16xf32>
    %c0_52 = arith.constant 0 : index
    %c0_53 = arith.constant 0 : index
    %69 = vector.load %arg17[%c0_52, %c0_53] : memref<128x64xf32, #tpu.memory_space<vmem>>, vector<128x64xf32>
    %cst_54 = arith.constant dense<0.000000e+00> : vector<128x64xf32>
    %70 = tpu.matmul %68, %45, %cst_54 {dimension_numbers = #tpu.dot_dimension_numbers<[1], [0], [0], [1], [0, 0, 1, 1], [], []>} : vector<128x16xf32>, vector<16x64xf32>, vector<128x64xf32> -> vector<128x64xf32>
    %71 = arith.mulf %70, %69 : vector<128x64xf32>
    %cst_55 = arith.constant dense<0.000000e+00> : vector<16x64xf32>
    %72 = tpu.matmul %67, %71, %cst_55 {dimension_numbers = #tpu.dot_dimension_numbers<[1], [0], [0], [1], [0, 0, 1, 1], [], []>} : vector<16x128xf32>, vector<128x64xf32>, vector<16x64xf32> -> vector<16x64xf32>
    %cst_56 = arith.constant dense<0.000000e+00> : vector<16x64xf32>
    %73 = tpu.matmul %67, %69, %cst_56 {dimension_numbers = #tpu.dot_dimension_numbers<[1], [0], [0], [1], [0, 0, 1, 1], [], []>} : vector<16x128xf32>, vector<128x64xf32>, vector<16x64xf32> -> vector<16x64xf32>
    %74 = tpu.reciprocal %73 {approx = true} : vector<16x64xf32> -> vector<16x64xf32>
    %75 = arith.mulf %72, %74 : vector<16x64xf32>
    %76 = vector.broadcast %44 : vector<1x64xf32> to vector<16x64xf32>
    %77 = arith.addf %75, %76 : vector<16x64xf32>
    %cst_57 = arith.constant 0.000000e+00 : f32
    %78 = vector.broadcast %cst_57 : f32 to vector<16x64xf32>
    %79 = arith.maximumf %77, %78 : vector<16x64xf32>
    %c0_58 = arith.constant 0 : index
    %c0_59 = arith.constant 0 : index
    %80 = vector.load %arg11[%c0_58, %c0_59] : memref<64x8xf32, #tpu.memory_space<vmem>>, vector<64x8xf32>
    %c0_60 = arith.constant 0 : index
    %c0_61 = arith.constant 0 : index
    %81 = vector.load %arg12[%c0_60, %c0_61] : memref<8x16xf32, #tpu.memory_space<vmem>>, vector<8x16xf32>
    %c0_62 = arith.constant 0 : index
    %c0_63 = arith.constant 0 : index
    %82 = vector.load %arg13[%c0_62, %c0_63] : memref<8x1xf32, #tpu.memory_space<vmem>>, vector<8x1xf32>
    %c0_64 = arith.constant 0 : index
    %c0_65 = arith.constant 0 : index
    %83 = vector.load %arg14[%c0_64, %c0_65] : memref<1x8xf32, #tpu.memory_space<vmem>>, vector<1x8xf32>
    %cst_66 = arith.constant dense<0.000000e+00> : vector<16x8xf32>
    %84 = tpu.matmul %79, %80, %cst_66 {dimension_numbers = #tpu.dot_dimension_numbers<[1], [0], [0], [1], [0, 0, 1, 1], [], []>} : vector<16x64xf32>, vector<64x8xf32>, vector<16x8xf32> -> vector<16x8xf32>
    %cst_67 = arith.constant dense<0.000000e+00> : vector<16x16xf32>
    %85 = tpu.matmul %84, %81, %cst_67 {dimension_numbers = #tpu.dot_dimension_numbers<[1], [0], [0], [1], [0, 0, 1, 1], [], []>} : vector<16x8xf32>, vector<8x16xf32>, vector<16x16xf32> -> vector<16x16xf32>
    %cst_68 = arith.constant dense<0.000000e+00> : vector<16x1xf32>
    %86 = tpu.matmul %84, %82, %cst_68 {dimension_numbers = #tpu.dot_dimension_numbers<[1], [0], [0], [1], [0, 0, 1, 1], [], []>} : vector<16x8xf32>, vector<8x1xf32>, vector<16x1xf32> -> vector<16x1xf32>
    %87 = tpu.transpose %86, [1, 0] : vector<16x1xf32> -> vector<1x16xf32>
    %88 = vector.broadcast %87 : vector<1x16xf32> to vector<16x16xf32>
    %89 = arith.addf %85, %88 : vector<16x16xf32>
    %cst_69 = arith.constant 0.000000e+00 : f32
    %90 = vector.broadcast %cst_69 : f32 to vector<16x16xf32>
    %91 = arith.cmpf ogt, %89, %90 : vector<16x16xf32>
    %cst_70 = arith.constant 2.000000e-01 : f32
    %92 = vector.broadcast %cst_70 : f32 to vector<16x16xf32>
    %93 = arith.mulf %92, %89 : vector<16x16xf32>
    %94 = arith.select %91, %89, %93 : vector<16x16xi1>, vector<16x16xf32>
    %95 = vector.extract_strided_slice %0 {offsets = [0, 0], sizes = [16, 16], strides = [1, 1]} : vector<16x128xf32> to vector<16x16xf32>
    %96 = arith.addf %94, %95 : vector<16x16xf32>
    %cst_71 = arith.constant dense<0xFF800000> : vector<16xf32>
    %97 = vector.multi_reduction <maximumf>, %96, %cst_71 [1] : vector<16x16xf32> to vector<16xf32>
    %98 = vector.shape_cast %97 : vector<16xf32> to vector<16x1xf32>
    %99 = vector.broadcast %98 : vector<16x1xf32> to vector<16x16xf32>
    %100 = arith.subf %96, %99 : vector<16x16xf32>
    %101 = math.exp %100 : vector<16x16xf32>
    %cst_72 = arith.constant dense<0.000000e+00> : vector<16x8xf32>
    %102 = tpu.matmul %101, %84, %cst_72 {dimension_numbers = #tpu.dot_dimension_numbers<[1], [0], [0], [1], [0, 0, 1, 1], [], []>} : vector<16x16xf32>, vector<16x8xf32>, vector<16x8xf32> -> vector<16x8xf32>
    %cst_73 = arith.constant dense<0.000000e+00> : vector<16xf32>
    %103 = vector.multi_reduction <add>, %101, %cst_73 [1] : vector<16x16xf32> to vector<16xf32>
    %104 = vector.shape_cast %103 : vector<16xf32> to vector<16x1xf32>
    %105 = tpu.reciprocal %104 {approx = true} : vector<16x1xf32> -> vector<16x1xf32>
    %106 = vector.broadcast %105 : vector<16x1xf32> to vector<16x8xf32>
    %107 = arith.mulf %102, %106 : vector<16x8xf32>
    %108 = vector.broadcast %83 : vector<1x8xf32> to vector<16x8xf32>
    %109 = arith.addf %107, %108 : vector<16x8xf32>
    %cst_74 = arith.constant dense<0xFF800000> : vector<16xf32>
    %110 = vector.multi_reduction <maximumf>, %109, %cst_74 [1] : vector<16x8xf32> to vector<16xf32>
    %111 = vector.shape_cast %110 : vector<16xf32> to vector<16x1xf32>
    %112 = vector.broadcast %111 : vector<16x1xf32> to vector<16x8xf32>
    %113 = arith.subf %109, %112 : vector<16x8xf32>
    %114 = math.exp %113 : vector<16x8xf32>
    %cst_75 = arith.constant dense<0.000000e+00> : vector<16xf32>
    %115 = vector.multi_reduction <add>, %114, %cst_75 [1] : vector<16x8xf32> to vector<16xf32>
    %116 = vector.shape_cast %115 : vector<16xf32> to vector<16x1xf32>
    %117 = math.log %116 : vector<16x1xf32>
    %118 = arith.addf %117, %111 : vector<16x1xf32>
    %119 = vector.broadcast %118 : vector<16x1xf32> to vector<16x8xf32>
    %120 = arith.subf %109, %119 : vector<16x8xf32>
    %c0_76 = arith.constant 0 : index
    %c0_77 = arith.constant 0 : index
    %121 = vector.load %arg18[%c0_76, %c0_77] : memref<16x8xf32, #tpu.memory_space<vmem>>, vector<16x8xf32>
    tpu.vector_store %arg18[%c0_76, %c0_77], %120 {strides = array<i32>} : memref<16x8xf32, #tpu.memory_space<vmem>>, vector<16x8xf32>,
    return
  }
  func.func @transform_0(%arg0: i32) -> (i32, i32) {
    %c0_i32 = arith.constant 0 : i32
    %c0_i32_0 = arith.constant 0 : i32
    %c0_i32_1 = arith.constant 0 : i32
    return %c0_i32, %c0_i32_0 : i32, i32
  }
  func.func @transform_1(%arg0: i32) -> (i32, i32) {
    %c0_i32 = arith.constant 0 : i32
    %c0_i32_0 = arith.constant 0 : i32
    %c0_i32_1 = arith.constant 0 : i32
    return %c0_i32, %c0_i32_0 : i32, i32
  }
  func.func @transform_2(%arg0: i32) -> (i32, i32) {
    %c0_i32 = arith.constant 0 : i32
    %c0_i32_0 = arith.constant 0 : i32
    %c0_i32_1 = arith.constant 0 : i32
    return %c0_i32, %c0_i32_0 : i32, i32
  }
  func.func @transform_3(%arg0: i32) -> (i32, i32) {
    %c0_i32 = arith.constant 0 : i32
    %c0_i32_0 = arith.constant 0 : i32
    %c0_i32_1 = arith.constant 0 : i32
    return %c0_i32, %c0_i32_0 : i32, i32
  }
  func.func @transform_4(%arg0: i32) -> (i32, i32) {
    %c0_i32 = arith.constant 0 : i32
    %c0_i32_0 = arith.constant 0 : i32
    %c0_i32_1 = arith.constant 0 : i32
    return %c0_i32, %c0_i32_0 : i32, i32
  }
  func.func @transform_5(%arg0: i32) -> (i32, i32) {
    %c0_i32 = arith.constant 0 : i32
    %c0_i32_0 = arith.constant 0 : i32
    %c0_i32_1 = arith.constant 0 : i32
    return %c0_i32, %c0_i32_0 : i32, i32
  }
  func.func @transform_6(%arg0: i32) -> (i32, i32) {
    %c0_i32 = arith.constant 0 : i32
    %c0_i32_0 = arith.constant 0 : i32
    %c0_i32_1 = arith.constant 0 : i32
    return %c0_i32, %c0_i32_0 : i32, i32
  }
  func.func @transform_7(%arg0: i32) -> (i32, i32) {
    %c0_i32 = arith.constant 0 : i32
    %c0_i32_0 = arith.constant 0 : i32
    %c0_i32_1 = arith.constant 0 : i32
    return %c0_i32, %c0_i32_0 : i32, i32
  }
  func.func @transform_8(%arg0: i32) -> (i32, i32) {
    %c0_i32 = arith.constant 0 : i32
    %c0_i32_0 = arith.constant 0 : i32
    %c0_i32_1 = arith.constant 0 : i32
    return %c0_i32, %c0_i32_0 : i32, i32
  }
  func.func @transform_9(%arg0: i32) -> (i32, i32) {
    %c0_i32 = arith.constant 0 : i32
    %c0_i32_0 = arith.constant 0 : i32
    %c0_i32_1 = arith.constant 0 : i32
    return %c0_i32, %c0_i32_0 : i32, i32
  }
  func.func @transform_10(%arg0: i32) -> (i32, i32) {
    %c0_i32 = arith.constant 0 : i32
    %c0_i32_0 = arith.constant 0 : i32
    %c0_i32_1 = arith.constant 0 : i32
    return %c0_i32, %c0_i32_0 : i32, i32
  }
  func.func @transform_11(%arg0: i32) -> (i32, i32) {
    %c0_i32 = arith.constant 0 : i32
    %c0_i32_0 = arith.constant 0 : i32
    %c0_i32_1 = arith.constant 0 : i32
    return %c0_i32, %c0_i32_0 : i32, i32
  }
  func.func @transform_12(%arg0: i32) -> (i32, i32) {
    %c0_i32 = arith.constant 0 : i32
    %c0_i32_0 = arith.constant 0 : i32
    %c0_i32_1 = arith.constant 0 : i32
    return %c0_i32, %c0_i32_0 : i32, i32
  }
  func.func @transform_13(%arg0: i32) -> (i32, i32) {
    %c0_i32 = arith.constant 0 : i32
    %c0_i32_0 = arith.constant 0 : i32
    %c0_i32_1 = arith.constant 0 : i32
    return %c0_i32, %c0_i32_0 : i32, i32
  }
  func.func @transform_14(%arg0: i32) -> (i32, i32) {
    %c0_i32 = arith.constant 0 : i32
    %c0_i32_0 = arith.constant 0 : i32
    %c0_i32_1 = arith.constant 0 : i32
    return %c0_i32, %c0_i32_0 : i32, i32
  }
  func.func @transform_15(%arg0: i32) -> (i32, i32) {
    %c0_i32 = arith.constant 0 : i32
    %c0_i32_0 = arith.constant 0 : i32
    %c0_i32_1 = arith.constant 0 : i32
    return %c0_i32, %c0_i32_0 : i32, i32
  }
  func.func @transform_16(%arg0: i32) -> (i32, i32) {
    %c0_i32 = arith.constant 0 : i32
    %c0_i32_0 = arith.constant 0 : i32
    %c0_i32_1 = arith.constant 0 : i32
    return %c0_i32, %c0_i32_0 : i32, i32
  }
  func.func @transform_17(%arg0: i32) -> (i32, i32) {
    %c0_i32 = arith.constant 0 : i32
    %c0_i32_0 = arith.constant 0 : i32
    %c0_i32_1 = arith.constant 0 : i32
    return %c0_i32, %c0_i32_0 : i32, i32
  }
}

</mosaic_0001>

<bundles_post_ra>
// kernel: tpu_custom_call.1
= control target key start
LH: loop header
LB: loop body
LE: loop exit
PB: predicated region body
PF: predicated region fallthrough
CT: control target
= control target key end

     0   :  { %vm79_vm0 = vcmask 130048   ;;  %vm161_vm1 = vcmask 523264   ;;  %v3200_v32 = vmov 0.0|0.0   ;;  %vm3201_vm3 = vmmov 0   ;;  %s3957_s2 = inlined_call_operand.vmem [shape: f32[16,64], index: 2, kind: input, shape index: {}]   ;;  %s3958_s0 = inlined_call_operand.vmem [shape: f32[16,16], index: 0, kind: input, shape index: {}]   ;;  %s3959_s4 = inlined_call_operand.vmem [shape: f32[64,8], index: 4, kind: input, shape index: {}]   ;;  %s3960_s3 = inlined_call_operand.vmem [shape: f32[64,128], index: 3, kind: input, shape index: {}]   ;;  %s3961_s15 = inlined_call_operand.vmem [shape: f32[128,16], index: 15, kind: input, shape index: {}]   ;;  %s3962_s16 = inlined_call_operand.vmem [shape: f32[128,64], index: 16, kind: input, shape index: {}]   ;;  %s3963_s14 = inlined_call_operand.vmem [shape: f32[8,128], index: 14, kind: input, shape index: {}]   ;;  %s3964_s1 = inlined_call_operand.vmem [shape: f32[16,128], index: 1, kind: input, shape index: {}]   ;;  %s3965_s6 = inlined_call_operand.vmem [shape: f32[64,64], index: 6, kind: input, shape index: {}]   ;;  %s3966_s8 = inlined_call_operand.vmem [shape: f32[64,8], index: 8, kind: input, shape index: {}]   ;;  %s3967_s5 = inlined_call_operand.vmem [shape: f32[1,64], index: 5, kind: input, shape index: {}]   ;;  %s3968_s7 = inlined_call_operand.vmem [shape: f32[64,128], index: 7, kind: input, shape index: {}]   ;;  %s3969_s10 = inlined_call_operand.vmem [shape: f32[64,8], index: 10, kind: input, shape index: {}]   ;;  %s3970_s12 = inlined_call_operand.vmem [shape: f32[8,1], index: 12, kind: input, shape index: {}]   ;;  %s3971_s9 = inlined_call_operand.vmem [shape: f32[1,64], index: 9, kind: input, shape index: {}]   ;;  %s3972_s11 = inlined_call_operand.vmem [shape: f32[8,16], index: 11, kind: input, shape index: {}]   ;;  %s3973_s13 = inlined_call_operand.vmem [shape: f32[1,8], index: 13, kind: input, shape index: {}]   ;;  %s3974_s17 = inlined_call_operand.vmem [shape: f32[16,8], index: 17, kind: output, shape index: {}]  }
   0x1   :  { %3982 = sst [smem:[#allocation4_spill]] %s3957_s2  ;;  %v70_v4 = vld [vmem:[%s3959_s4] sm:$0xff]  ;;  %v71_v5 = vld [vmem:[%s3959_s4 + $0x8] sm:$0xff]  ;;  %v72_v7 = vld [vmem:[%s3959_s4 + $0x10] sm:$0xff]  ;;  %v3977_v36 = vmov 0.0   ;;  %vm1808_vm8 = vcmask 64512  }
   0x2   :  { %3983 = sst [smem:[#allocation5_spill]] %s3958_s0  ;;  %s3984_s26 = sld [smem:[#allocation4_spill]]  ;;  %v2865_v6 = vpack.c.bf16 %v71_v5, %v70_v4  ;;  %v73_v8 = vld [vmem:[%s3959_s4 + $0x18] sm:$0xff]  ;;  %v74_v10 = vld [vmem:[%s3959_s4 + $0x20] sm:$0xff]  ;;  %v75_v11 = vld [vmem:[%s3959_s4 + $0x28] sm:$0xff] }
   0x3   :  { %s3985_s30 = sld [smem:[#allocation5_spill]]  ;;  %v2869_v9 = vpack.c.bf16 %v73_v8, %v72_v7  ;;  %v2873_v13 = vpack.c.bf16 %v75_v11, %v74_v10  ;;  %v76_v14 = vld [vmem:[%s3959_s4 + $0x30] sm:$0xff]  ;;  %v77_v15 = vld [vmem:[%s3959_s4 + $0x38] sm:$0xff]  ;;  %v62_v17 = vld [vmem:[%s3960_s3] sm:$0xff] }
   0x4   :  { %2866 = vmatprep.subr.bf16.mxu1 %v2865_v6  ;;  %v2877_v16 = vpack.c.bf16 %v77_v15, %v76_v14  ;;  %v63_v18 = vld [vmem:[%s3960_s3 + $0x8] sm:$0xff]  ;;  %v64_v20 = vld [vmem:[%s3960_s3 + $0x10] sm:$0xff]  ;;  %v65_v21 = vld [vmem:[%s3960_s3 + $0x18] sm:$0xff] }
   0x5   :  { %2868 = vmatpush3.bf16.msra.mxu1 %v2865_v6  ;;  %v2913_v19 = vpack.c.bf16 %v63_v18, %v62_v17  ;;  %v2917_v24 = vpack.c.bf16 %v65_v21, %v64_v20  ;;  %v66_v26 = vld [vmem:[%s3960_s3 + $0x20] sm:$0xff]  ;;  %v67_v27 = vld [vmem:[%s3960_s3 + $0x28] sm:$0xff]  ;;  %v68_v29 = vld [vmem:[%s3960_s3 + $0x30] sm:$0xff] }
   0x6   :  { %2870 = vmatprep.subr.bf16.mxu1 %v2869_v9  ;;  %v2921_v28 = vpack.c.bf16 %v67_v27, %v66_v26  ;;  %v69_v30 = vld [vmem:[%s3960_s3 + $0x38] sm:$0xff]  ;;  %v3363_v33 = vld [vmem:[%s3961_s15] sm:$0xff]  ;;  %v3368_v34 = vld [vmem:[%s3961_s15 + $0x8] sm:$0xff] }
   0x7   :  { %v2925_v31 = vpack.c.bf16 %v69_v30, %v68_v29  ;;  %vm3372_vm2 = vmpackc.low %vm79_vm0, %vm79_vm0  ;;  %v3380_v37 = vpack.c.bf16 %v3368_v34, %v3363_v33  ;;  %v3387_v38 = vld [vmem:[%s3961_s15 + $0x10] sm:$0xff]  ;;  %v3400_v39 = vld [vmem:[%s3961_s15 + $0x18] sm:$0xff] }
   0x8   :  { %v60_v0 = vld [vmem:[%s3984_s26] sm:$0xff]  ;;  %v61_v1 = vld [vmem:[%s3984_s26 + $0x8] sm:$0xff]  ;;  %v3411_v41 = vpack.c.bf16 %v3400_v39, %v3387_v38  ;;  %v3423_v43 = vld [vmem:[%s3961_s15 + $0x30] sm:$0xff] }
   0x9   :  { %v58_v2 = vld [vmem:[%s3985_s30] sm:$0xff]  ;;  %v2861_v3 = vpack.c.bf16 %v61_v1, %v60_v0  ;;  %v59_v12 = vld [vmem:[%s3985_s30 + $0x8] sm:$0xff]  ;;  %2872 = vmatpush3.bf16.msra.mxu1 %v2869_v9  ;;  %v3436_v44 = vld [vmem:[%s3961_s15 + $0x38] sm:$0xff] }
   0xa   :  { %2461 = vmatprep.mubr.msk.f32.mxu0 %vm79_vm0, %v58_v2  ;;  %2874 = vmatprep.subr.bf16.mxu1 %v2873_v13  ;;  %v3405_v40 = vld [vmem:[%s3961_s15 + $0x20] sm:$0xff]  ;;  %v3418_v42 = vld [vmem:[%s3961_s15 + $0x28] sm:$0xff]  ;;  %v3459_v48 = vld [vmem:[%s3961_s15 + $0x50] sm:$0xff]  ;;  %v3483_v51 = vpack.c.bf16 %v3436_v44, %v3423_v43 }
   0xb   :  { %2862 = vmatprep.subr.bf16.mxu0 %v2861_v3  ;;  %v3441_v45 = vld [vmem:[%s3961_s15 + $0x40] sm:$0xff]  ;;  %v3447_v46 = vpack.c.bf16 %v3418_v42, %v3405_v40  ;;  %v3454_v47 = vld [vmem:[%s3961_s15 + $0x48] sm:$0xff]  ;;  %v3472_v49 = vld [vmem:[%s3961_s15 + $0x58] sm:$0xff] }
   0xc   :  { %2864 = vmatpush3.bf16.msra.mxu0 %v2861_v3  ;;  %v3477_v50 = vld [vmem:[%s3961_s15 + $0x60] sm:$0xff]  ;;  %v3490_v52 = vld [vmem:[%s3961_s15 + $0x68] sm:$0xff]  ;;  %v3495_v53 = vld [vmem:[%s3961_s15 + $0x70] sm:$0xff]  ;;  %v3514_v55 = vpack.c.bf16 %v3454_v47, %v3441_v45  ;;  %v3522_v56 = vpack.c.bf16 %v3472_v49, %v3459_v48 }
   0xd   :  { %2876 = vmatpush3.bf16.msra.mxu1 %v2873_v13  ;;  %2881 = vmatprep.subr.bf16.mxu0 %v3200_v32  ;;  %v3508_v54 = vld [vmem:[%s3961_s15 + $0x78] sm:$0xff]  ;;  %v3530_v57 = vpack.c.bf16 %v3490_v52, %v3477_v50  ;;  %v3551_v1 = vld [vmem:[%s3962_s16 + $0x8] sm:$0xff]  ;;  %v3556_v2 = vld [vmem:[%s3962_s16] sm:$0xff] }
   0xe   :  { %2878 = vmatprep.subr.bf16.mxu1 %v2877_v16  ;;  %v3538_v58 = vpack.c.bf16 %v3508_v54, %v3495_v53  ;;  %v3561_v4 = vld [vmem:[%s3962_s16 + $0x18] sm:$0xff]  ;;  %v3567_v7 = vpack.c.bf16 %v3551_v1, %v3556_v2  ;;  %v3572_v9 = vld [vmem:[%s3962_s16 + $0x10] sm:$0xff]  ;;  %v3577_v10 = vld [vmem:[%s3962_s16 + $0x28] sm:$0xff] }
   0xf   :  { %2462 = vmatmul.mubr.msk.f32.vlgmr.msra.gmra.mrb[0].mxu0 %vm79_vm0, %v59_v12  ;;  %v3582_v13 = vpack.c.bf16 %v3561_v4, %v3572_v9  ;;  %v3587_v14 = vld [vmem:[%s3962_s16 + $0x20] sm:$0xff]  ;;  %v3594_v18 = vld [vmem:[%s3962_s16 + $0x38] sm:$0xff]  ;;  %v3601_v21 = vld [vmem:[%s3962_s16 + $0x30] sm:$0xff] }
  0x10   :  { %2515 = vmatprep.mubr.msk.f32.mxu0 %vm3201_vm3, %v3977_v36  ;;  %v3612_v26 = vld [vmem:[%s3962_s16 + $0x48] sm:$0xff]  ;;  %v3618_v29 = vld [vmem:[%s3962_s16 + $0x40] sm:$0xff] }
  0x11   :  { %2880 = vmatpush3.bf16.msra.mxu1 %v2877_v16 }
  0x12   :  { %2914 = vmatprep.subr.bf16.mxu1 %v2913_v19 }
  0x15   :  { %2884 = vmatpush3.bf16.xpose.msk.msra.mxu0 %vm3372_vm2, %v3380_v37 }
  0x16   :  { %2885 = vmatprep.subr.bf16.mxu0 %v3200_v32 }
  0x1d   :  { %2888 = vmatpush3.bf16.xpose.msk.msra.mxu0 %vm3372_vm2, %v3411_v41 }
  0x1e   :  { %2889 = vmatprep.subr.bf16.mxu0 %v3200_v32 }
  0x25   :  { %2892 = vmatpush3.bf16.xpose.msk.msra.mxu0 %vm3372_vm2, %v3447_v46 }
  0x26   :  { %2893 = vmatprep.subr.bf16.mxu0 %v3200_v32 }
  0x2d   :  { %2896 = vmatpush3.bf16.xpose.msk.msra.mxu0 %vm3372_vm2, %v3483_v51 }
  0x2e   :  { %2897 = vmatprep.subr.bf16.mxu0 %v3200_v32 }
  0x35   :  { %2900 = vmatpush3.bf16.xpose.msk.msra.mxu0 %vm3372_vm2, %v3514_v55 }
  0x36   :  { %2901 = vmatprep.subr.bf16.mxu0 %v3200_v32 }
  0x3d   :  { %2904 = vmatpush3.bf16.xpose.msk.msra.mxu0 %vm3372_vm2, %v3522_v56 }
  0x3e   :  { %2905 = vmatprep.subr.bf16.mxu0 %v3200_v32 }
  0x45   :  { %2908 = vmatpush3.bf16.xpose.msk.msra.mxu0 %vm3372_vm2, %v3530_v57 }
  0x46   :  { %2909 = vmatprep.subr.bf16.mxu0 %v3200_v32 }
  0x4d   :  { %2912 = vmatpush3.bf16.xpose.msk.msra.mxu0 %vm3372_vm2, %v3538_v58 }
  0x4e   :  { %2966 = vmatprep.subr.bf16.mxu0 %v3567_v7 }
  0xe2   :  { %v2463_v22 = vpop.f32.mrb[0].mxu0 }
  0xe3   :  { %v152_v23 = vpop.f32.mrb[1].mxu0 }
  0xe4   :  { %v2929_v25 = vpack.c.bf16 %v2463_v22, %v152_v23  ;;  %2480 = vmatprep.mubr.msk.f32.mxu1 %vm161_vm1, %v152_v23 }
  0xe5   :  { %2481 = vmatmul.mubr.msk.f32.vlgmr.msra.gmra.mrb[0].mxu1 %vm161_vm1, %v2463_v22 }
  0xe6   :  { %2916 = vmatpush3.bf16.msra.mxu1 %v2913_v19  ;;  %2534 = vmatprep.mubr.msk.f32.mxu1 %vm161_vm1, %v152_v23 }
  0xe7   :  { %2918 = vmatprep.subr.bf16.mxu1 %v2917_v24 }
  0xea   :  { %2920 = vmatpush3.bf16.msra.mxu1 %v2917_v24  ;;  %v3606_v24 = vpack.c.bf16 %v3577_v10, %v3587_v14 }
  0xeb   :  { %2922 = vmatprep.subr.bf16.mxu1 %v2921_v28 }
  0xee   :  { %2924 = vmatpush3.bf16.msra.mxu1 %v2921_v28 }
  0xef   :  { %2926 = vmatprep.subr.bf16.mxu1 %v2925_v31 }
  0xf2   :  { %2928 = vmatpush3.bf16.msra.mxu1 %v2925_v31 }
  0xf3   :  { %2930 = vmatprep.subr.bf16.mxu1 %v2929_v25 }
  0xf5   :  { %2535 = vmatmul.mubr.msk.f32.vlgmr.msra.gmra.mrb[2].mxu1 %vm161_vm1, %v2463_v22 }
  0xf6   :  { %2932 = vmatpush3.bf16.msra.mxu1 %v2929_v25  ;;  %2541 = vmatprep.mubr.msk.f32.mxu1 %vm79_vm0, %v3363_v33 }
  0xf9   :  { %2542 = vmatmul.mubr.msk.f32.vlgmr.msra.gmra.mrb[4].mxu1 %vm79_vm0, %v3368_v34 }
  0xfa   :  { %2544 = vmatprep.mubr.msk.f32.mxu1 %vm79_vm0, %v3387_v38 }
  0xfd   :  { %2545 = vmatmul.mubr.msk.f32.gmra.mrb[6].mxu1 %vm79_vm0, %v3400_v39 }
  0xfe   :  { %2547 = vmatprep.mubr.msk.f32.mxu1 %vm79_vm0, %v3405_v40 }
 0x101   :  { %2548 = vmatmul.mubr.msk.f32.gmra.mrb[8].mxu1 %vm79_vm0, %v3418_v42 }
 0x102   :  { %2550 = vmatprep.mubr.msk.f32.mxu1 %vm79_vm0, %v3423_v43 }
 0x105   :  { %2551 = vmatmul.mubr.msk.f32.gmra.mrb[10].mxu1 %vm79_vm0, %v3436_v44 }
 0x106   :  { %2553 = vmatprep.mubr.msk.f32.mxu1 %vm79_vm0, %v3441_v45 }
 0x109   :  { %2554 = vmatmul.mubr.msk.f32.gmra.mrb[12].mxu1 %vm79_vm0, %v3454_v47 }
 0x10a   :  { %2556 = vmatprep.mubr.msk.f32.mxu1 %vm79_vm0, %v3459_v48 }
 0x10d   :  { %2557 = vmatmul.mubr.msk.f32.gmra.mrb[14].mxu1 %vm79_vm0, %v3472_v49 }
 0x10e   :  { %2559 = vmatprep.mubr.msk.f32.mxu1 %vm79_vm0, %v3477_v50 }
 0x111   :  { %2560 = vmatmul.mubr.msk.f32.gmra.mrb[16].mxu1 %vm79_vm0, %v3490_v52 }
 0x112   :  { %2562 = vmatprep.mubr.msk.f32.mxu1 %vm79_vm0, %v3495_v53 }
 0x115   :  { %2563 = vmatmul.mubr.msk.f32.gmra.mrb[18].mxu1 %vm79_vm0, %v3508_v54 }
 0x1b8   :  { %v2482_v59 = vpop.f32.mrb[0].mxu1 }
 0x1b9   :  { %v234_v60 = vpop.f32.mrb[1].mxu1 }
 0x1ba   :  { %243 = vxpose.xlu0.b32.start [1/2] (short) (narrow) %v234_v60, 8 }
 0x1be   :  { %244 = vxpose.xlu0.b32.end [2/2] (short) (narrow) %v2482_v59, 8 }
 0x1c8   :  { %v3543_v61 = vpop.f32.mrb[2].mxu1 }
 0x1c9   :  { %v3545_v62 = vpop.f32.mrb[3].mxu1 }
 0x1cc   :  { %v2543_v0 = vpop.f32.mrb[4].mxu1 }
 0x1cd   :  { %v659_v3 = vpop.f32.mrb[5].mxu1  ;;  %v739_v5 = vmul.f32 %v2543_v0, %v3551_v1 }
 0x1ce   :  { %v738_v6 = vmul.f32 %v659_v3, %v3556_v2  ;;  %v3625_v3 = vpack.c.bf16 %v3594_v18, %v3601_v21 }
 0x1d0   :  { %v2546_v8 = vpop.f32.mrb[6].mxu1  ;;  %v2933_v15 = vpack.c.bf16 %v739_v5, %v738_v6 }
 0x1d1   :  { %v741_v11 = vmul.f32 %v2546_v8, %v3561_v4  ;;  %v669_v12 = vpop.f32.mrb[7].mxu1  ;;  %v3632_v8 = vpack.c.bf16 %v3612_v26, %v3618_v29 }
 0x1d2   :  { %v740_v16 = vmul.f32 %v669_v12, %v3572_v9  ;;  %2934 = vmatprep.subr.bf16.mxu1 %v2933_v15 }
 0x1d3   :  { %2936 = vmatpush3.bf16.msra.mxu1 %v2933_v15 }
 0x1d4   :  { %v2549_v17 = vpop.f32.mrb[8].mxu1  ;;  %v2937_v22 = vpack.c.bf16 %v741_v11, %v740_v16  ;;  %v3641_v11 = vld [vmem:[%s3963_s14] sm:$0xff] }
 0x1d5   :  { %v743_v19 = vmul.f32 %v2549_v17, %v3577_v10  ;;  %v679_v20 = vpop.f32.mrb[9].mxu1 }
 0x1d6   :  { %v742_v23 = vmul.f32 %v679_v20, %v3587_v14  ;;  %2938 = vmatprep.subr.bf16.mxu1 %v2937_v22 }
 0x1d7   :  { %2940 = vmatpush3.bf16.msra.mxu1 %v2937_v22 }
 0x1d8   :  { %v2552_v25 = vpop.f32.mrb[10].mxu1  ;;  %v2941_v30 = vpack.c.bf16 %v743_v19, %v742_v23 }
 0x1d9   :  { %v745_v27 = vmul.f32 %v2552_v25, %v3594_v18  ;;  %v689_v28 = vpop.f32.mrb[11].mxu1 }
 0x1da   :  { %v744_v31 = vmul.f32 %v689_v28, %v3601_v21  ;;  %2942 = vmatprep.subr.bf16.mxu1 %v2941_v30 }
 0x1db   :  { %2944 = vmatpush3.bf16.msra.mxu1 %v2941_v30  ;;  %v3649_v30 = vld [vmem:[%s3964_s1] sm:$0xff] }
 0x1dc   :  { %v2555_v59 = vpop.f32.mrb[12].mxu1  ;;  %v2945_v0 = vpack.c.bf16 %v745_v27, %v744_v31 }
 0x1dd   :  { %v747_v60 = vmul.f32 %v2555_v59, %v3612_v26 }
 0x1de   :  { %2946 = vmatprep.subr.bf16.mxu1 %v2945_v0 }
 0x1df   :  { %2948 = vmatpush3.bf16.msra.mxu1 %v2945_v0  ;;  %v3655_v0 = vld [vmem:[%s3964_s1 + $0x8] sm:$0xff] }
 0x23a   :  { %v259_v63 = vpop.trf.xlu0 }
 0x23b   :  { %2516 = vmatmul.mubr.msk.f32.vlgmr.msra.gmra.mrb[2].mxu0 %vm79_vm0, %v259_v63  ;;  %v699_v63 = vpop.f32.mrb[13].mxu1 }
 0x23c   :  { %2968 = vmatpush3.bf16.msra.mxu0 %v3567_v7  ;;  %v746_v5 = vmul.f32 %v699_v63, %v3618_v29 }
 0x23d   :  { %2970 = vmatprep.subr.bf16.mxu0 %v3582_v13 }
 0x23e   :  { %v2949_v6 = vpack.c.bf16 %v747_v60, %v746_v5  ;;  %v2558_v5 = vpop.f32.mrb[14].mxu1 }
 0x240   :  { %2972 = vmatpush3.bf16.msra.mxu0 %v3582_v13  ;;  %2950 = vmatprep.subr.bf16.mxu1 %v2949_v6 }
 0x241   :  { %2974 = vmatprep.subr.bf16.mxu0 %v3606_v24  ;;  %2952 = vmatpush3.bf16.msra.mxu1 %v2949_v6  ;;  %v3661_v6 = vld [vmem:[%s3962_s16 + $0x58] sm:$0xff] }
 0x244   :  { %2976 = vmatpush3.bf16.msra.mxu0 %v3606_v24 }
 0x245   :  { %2978 = vmatprep.subr.bf16.mxu0 %v3625_v3 }
 0x248   :  { %2980 = vmatpush3.bf16.msra.mxu0 %v3625_v3 }
 0x249   :  { %2982 = vmatprep.subr.bf16.mxu0 %v3632_v8 }
 0x24c   :  { %2984 = vmatpush3.bf16.msra.mxu0 %v3632_v8 }
 0x30e   :  { %v409_v12 = vpop.f32.mrb[2].mxu0 }
 0x30f   :  { %v413_v15 = vmul.f32 %v409_v12, %v3641_v11  ;;  %v2517_v16 = vpop.f32.mrb[3].mxu0  ;;  %v3666_v12 = vld [vmem:[%s3962_s16 + $0x50] sm:$0xff] }
 0x310   :  { %v749_v16 = vmul.f32 %v2558_v5, %v3661_v6  ;;  %v3700_v5 = vld [vmem:[%s3962_s16 + $0x70] sm:$0xff] }
 0x311   :  { %v414_v17 = vrot.slane %v413_v15, 4 }
 0x313   :  { %v415_v19 = vadd.f32 %v414_v17, %v413_v15  ;;  %v709_v15 = vpop.f32.mrb[15].mxu1 }
 0x314   :  { %v748_v17 = vmul.f32 %v709_v15, %v3666_v12 }
 0x315   :  { %v416_v20 = vrot.slane %v415_v19, 2 }
 0x317   :  { %v417_v22 = vadd.f32 %v416_v20, %v415_v19  ;;  %v3672_v19 = vpack.c.bf16 %v3661_v6, %v3666_v12  ;;  %v2953_v20 = vpack.c.bf16 %v749_v16, %v748_v17 }
 0x319   :  { %v418_v23 = vrot.slane %v417_v22, 1  ;;  %3988 = vst [vmem:[#allocation2_spill] sm:$0xff] %v3672_v19  ;;  %2986 = vmatprep.subr.bf16.mxu0 %v3672_v19  ;;  %2954 = vmatprep.subr.bf16.mxu1 %v2953_v20 }
 0x31a   :  { %2988 = vmatpush3.bf16.msra.mxu0 %v3672_v19  ;;  %2956 = vmatpush3.bf16.msra.mxu1 %v2953_v20 }
 0x31b   :  { %v419_v25 = vadd.f32 %v418_v23, %v417_v22  ;;  %v2561_v22 = vpop.f32.mrb[16].mxu1  ;;  %v3678_v23 = vld [vmem:[%s3962_s16 + $0x68] sm:$0xff] }
 0x31d   :  { %v487_v27 = vadd.f32 %v3545_v62, %v419_v25  ;;  %v492_v28 = vadd.f32 %v3543_v61, %v419_v25  ;;  %v3683_v25 = vld [vmem:[%s3962_s16 + $0x60] sm:$0xff] }
 0x31f   :  { %vm495_vm4 = vcmp.gt.f32.partialorder %v487_v27, 0.0  ;;  %v497_v31 = vmul.f32 0.2, %v487_v27  ;;  %v498_v59 = vmul.f32 0.2, %v492_v28  ;;  %vm496_vm5 = vcmp.gt.f32.partialorder %v492_v28, 0.0 }
 0x321   :  { %v499_v60 = vsel %vm495_vm4, %v487_v27, %v497_v31  ;;  %v500_v62 = vsel %vm496_vm5, %v492_v28, %v498_v59  ;;  %v719_v27 = vpop.f32.mrb[17].mxu1  ;;  %v751_v28 = vmul.f32 %v2561_v22, %v3678_v23  ;;  %v3690_v59 = vpack.c.bf16 %v3678_v23, %v3683_v25 }
 0x322   :  { %v501_v63 = vadd.f32 %v499_v60, %v3649_v30  ;;  %v502_v61 = vadd.f32 %v500_v62, %v3655_v0  ;;  %v750_v31 = vmul.f32 %v719_v27, %v3683_v25  ;;  %v3695_v60 = vld [vmem:[%s3962_s16 + $0x78] sm:$0xff]  ;;  %v2564_v62 = vpop.f32.mrb[18].mxu1 }
 0x323   :  { %3989 = vst [vmem:[#allocation3_spill] sm:$0xff] %v3690_v59  ;;  %v753_v15 = vmul.f32 %v2564_v62, %v3695_v60  ;;  %v729_v16 = vpop.f32.mrb[19].mxu1  ;;  %v3705_v17 = vpack.c.bf16 %v3695_v60, %v3700_v5  ;;  %2990 = vmatprep.subr.bf16.mxu0 %v3690_v59 }
 0x324   :  { %503 = vmax.xlane.f32.xlu1 %v501_v63  ;;  %v2957_v22 = vpack.c.bf16 %v751_v28, %v750_v31  ;;  %v752_v27 = vmul.f32 %v729_v16, %v3700_v5  ;;  %2992 = vmatpush3.bf16.msra.mxu0 %v3690_v59 }
 0x325   :  { %2994 = vmatprep.subr.bf16.mxu0 %v3705_v17 }
 0x326   :  { %v2961_v36 = vpack.c.bf16 %v753_v15, %v752_v27  ;;  %2958 = vmatprep.subr.bf16.mxu1 %v2957_v22 }
 0x327   :  { %2960 = vmatpush3.bf16.msra.mxu1 %v2957_v22  ;;  %v3990_v22 = vmov 0.0  }
 0x328   :  { %505 = vmax.xlane.f32.xlu1 %v502_v61  ;;  %2962 = vmatprep.subr.bf16.mxu1 %v2961_v36 }
 0x329   :  { %2996 = vmatpush3.bf16.msra.mxu0 %v3705_v17 }
 0x32a   :  { %3029 = vmatprep.subr.bf16.mxu0 %v3200_v32 }
 0x32b   :  { %2964 = vmatpush3.bf16.msra.mxu1 %v2961_v36  ;;  %v918_v36 = vld [vmem:[%s3965_s6] sm:$0xff] }
 0x3b1   :  { %v504_v20 = vpop.xlane.xlu1 %503 }
 0x3b2   :  { %v507_v62 = vsub.f32 %v501_v63, %v504_v20 }
 0x3b4   :  { %v509_v28 = vmul.f32 1.442695, %v507_v62 }
 0x3b5   :  { %v506_v31 = vpop.xlane.xlu1 %505 }
 0x3b6   :  { %3168 = vpow2.f32 %v509_v28  ;;  %v508_v16 = vsub.f32 %v502_v61, %v506_v31  ;;  %v934_v61 = vld [vmem:[%s3966_s8] sm:$0xff] }
 0x3b8   :  { %v511_v19 = vmul.f32 1.442695, %v508_v16  ;;  %v2191_v16 = vld [vmem:[%s3967_s5] ss:$0 sm:$0xff] }
 0x3ba   :  { %3170 = vpow2.f32 %v511_v19  ;;  %v935_v19 = vld [vmem:[%s3966_s8 + $0x8] sm:$0xff] }
 0x3c0   :  { %v3169_v59 = vpop.eup %3168 }
 0x3c1   :  { %2597 = vmatprep.mubr.f32.mxu1 %v3169_v59  ;;  %2632 = vmatprep.mubr.f32.mxu0 %v3169_v59  ;;  %v3013_v59 = vpack.c.bf16 %v935_v19, %v934_v61  ;;  %v941_v61 = vld [vmem:[%s3966_s8 + $0x38] sm:$0xff] }
 0x3c4   :  { %v3171_v15 = vpop.eup %3170 }
 0x3c5   :  { %2598 = vmatmul.mubr.f32.vlgmr.msra.gmra.mrb[20].mxu1 %v3171_v15  ;;  %2633 = vmatmul.mubr.f32.vlgmr.msra.gmra.mrb[4].mxu0 %v3171_v15 }
 0x3c6   :  { %3032 = vmatpush3.bf16.xpose.msk.msra.mxu0 %vm3372_vm2, %v3380_v37  ;;  %2705 = vmatprep.mubr.msk.f32.mxu0 %vm3201_vm3, %v3990_v22  ;;  %v919_v37 = vld [vmem:[%s3965_s6 + $0x8] sm:$0xff] }
 0x3c7   :  { %3033 = vmatprep.subr.bf16.mxu0 %v3200_v32 }
 0x3ce   :  { %3036 = vmatpush3.bf16.xpose.msk.msra.mxu0 %vm3372_vm2, %v3411_v41  ;;  %v2997_v41 = vpack.c.bf16 %v919_v37, %v918_v36 }
 0x3cf   :  { %3037 = vmatprep.subr.bf16.mxu0 %v3200_v32 }
 0x3d0   :  { %2998 = vmatprep.subr.bf16.mxu1 %v2997_v41 }
 0x3d1   :  { %3000 = vmatpush3.bf16.msra.mxu1 %v2997_v41 }
 0x3d6   :  { %3040 = vmatpush3.bf16.xpose.msk.msra.mxu0 %vm3372_vm2, %v3447_v46  ;;  %v920_v46 = vld [vmem:[%s3965_s6 + $0x10] sm:$0xff] }
 0x3d7   :  { %3041 = vmatprep.subr.bf16.mxu0 %v3200_v32 }
 0x3de   :  { %3044 = vmatpush3.bf16.xpose.msk.msra.mxu0 %vm3372_vm2, %v3483_v51  ;;  %v922_v51 = vld [vmem:[%s3965_s6 + $0x20] sm:$0xff] }
 0x3df   :  { %3045 = vmatprep.subr.bf16.mxu0 %v3200_v32 }
 0x3e6   :  { %3048 = vmatpush3.bf16.xpose.msk.msra.mxu0 %vm3372_vm2, %v3514_v55  ;;  %v923_v55 = vld [vmem:[%s3965_s6 + $0x28] sm:$0xff] }
 0x3e7   :  { %3049 = vmatprep.subr.bf16.mxu0 %v3200_v32 }
 0x3ee   :  { %3052 = vmatpush3.bf16.xpose.msk.msra.mxu0 %vm3372_vm2, %v3522_v56  ;;  %v3005_v56 = vpack.c.bf16 %v923_v55, %v922_v51 }
 0x3ef   :  { %3053 = vmatprep.subr.bf16.mxu0 %v3200_v32 }
 0x3f6   :  { %3056 = vmatpush3.bf16.xpose.msk.msra.mxu0 %vm3372_vm2, %v3530_v57  ;;  %v924_v57 = vld [vmem:[%s3965_s6 + $0x30] sm:$0xff] }
 0x3f7   :  { %3057 = vmatprep.subr.bf16.mxu0 %v3200_v32  ;;  %v921_v32 = vld [vmem:[%s3965_s6 + $0x18] sm:$0xff] }
 0x3f8   :  { %v3001_v35 = vpack.c.bf16 %v921_v32, %v920_v46  ;;  %v936_v46 = vld [vmem:[%s3966_s8 + $0x10] sm:$0xff]  ;;  %v937_v32 = vld [vmem:[%s3966_s8 + $0x18] sm:$0xff] }
 0x3f9   :  { %v3017_v55 = vpack.c.bf16 %v937_v32, %v936_v46  ;;  %v932_v46 = vld [vmem:[%s3968_s7 + $0x30] sm:$0xff]  ;;  %v933_v32 = vld [vmem:[%s3968_s7 + $0x38] sm:$0xff] }
 0x3fa   :  { %3002 = vmatprep.subr.bf16.mxu1 %v3001_v35 }
 0x3fb   :  { %3004 = vmatpush3.bf16.msra.mxu1 %v3001_v35 }
 0x3fc   :  { %3006 = vmatprep.subr.bf16.mxu1 %v3005_v56 }
 0x3fe   :  { %3060 = vmatpush3.bf16.xpose.msk.msra.mxu0 %vm3372_vm2, %v3538_v58  ;;  %v925_v58 = vld [vmem:[%s3965_s6 + $0x38] sm:$0xff] }
 0x3ff   :  { %v3009_v63 = vpack.c.bf16 %v925_v58, %v924_v57  ;;  %3008 = vmatpush3.bf16.msra.mxu1 %v3005_v56  ;;  %v938_v56 = vld [vmem:[%s3966_s8 + $0x20] sm:$0xff]  ;;  %v939_v57 = vld [vmem:[%s3966_s8 + $0x28] sm:$0xff] }
 0x400   :  { %v3021_v58 = vpack.c.bf16 %v939_v57, %v938_v56 }
 0x401   :  { %3010 = vmatprep.subr.bf16.mxu1 %v3009_v63 }
 0x403   :  { %3012 = vmatpush3.bf16.msra.mxu1 %v3009_v63  ;;  %v940_v63 = vld [vmem:[%s3966_s8 + $0x30] sm:$0xff] }
 0x404   :  { %3014 = vmatprep.subr.bf16.mxu1 %v3013_v59  ;;  %v3025_v19 = vpack.c.bf16 %v941_v61, %v940_v63 }
 0x498   :  { %v2599_v27 = vpop.f32.mrb[20].mxu1  ;;  %v2634_v20 = vpop.f32.mrb[4].mxu0 }
 0x499   :  { %3172 = vrcp.f32 %v2634_v20  ;;  %v820_v62 = vpop.f32.mrb[21].mxu1  ;;  %v895_v28 = vpop.f32.mrb[5].mxu0 }
 0x49a   :  { %3174 = vrcp.f32 %v895_v28  ;;  %v929_v28 = vld [vmem:[%s3968_s7 + $0x18] sm:$0xff] }
 0x4a3   :  { %v3173_v31 = vpop.eup %3172 }
 0x4a4   :  { %v3175_v15 = vpop.eup %3174  ;;  %v907_v22 = vmul.f32 %v3173_v31, %v2599_v27  ;;  %v927_v27 = vld [vmem:[%s3968_s7 + $0x8] sm:$0xff] }
 0x4a5   :  { %v906_v36 = vmul.f32 %v3175_v15, %v820_v62  ;;  %v928_v62 = vld [vmem:[%s3968_s7 + $0x10] sm:$0xff] }
 0x4a6   :  { %v915_v37 = vadd.f32 %v2191_v16, %v907_v22  ;;  %v3065_v15 = vpack.c.bf16 %v929_v28, %v928_v62 }
 0x4a7   :  { %v914_v41 = vadd.f32 %v2191_v16, %v906_v36  ;;  %v930_v36 = vld [vmem:[%s3968_s7 + $0x20] sm:$0xff] }
 0x4a8   :  { %v917_v51 = vmax.f32 %v915_v37, 0.0  ;;  %v931_v37 = vld [vmem:[%s3968_s7 + $0x28] sm:$0xff] }
 0x4a9   :  { %v916_v35 = vmax.f32 %v914_v41, 0.0  ;;  %v3069_v41 = vpack.c.bf16 %v931_v37, %v930_v36 }
 0x4ab   :  { %2651 = vmatprep.mubr.msk.f32.mxu1 %vm161_vm1, %v916_v35  ;;  %v3073_v35 = vpack.c.bf16 %v933_v32, %v932_v46 }
 0x4ac   :  { %2652 = vmatmul.mubr.msk.f32.vlgmr.msra.gmra.mrb[22].mxu1 %vm161_vm1, %v917_v51 }
 0x4ad   :  { %3016 = vmatpush3.bf16.msra.mxu1 %v3013_v59  ;;  %v926_v59 = vld [vmem:[%s3968_s7] sm:$0xff] }
 0x4ae   :  { %3018 = vmatprep.subr.bf16.mxu1 %v3017_v55  ;;  %v3061_v20 = vpack.c.bf16 %v927_v27, %v926_v59 }
 0x4b1   :  { %3020 = vmatpush3.bf16.msra.mxu1 %v3017_v55 }
 0x4b2   :  { %3022 = vmatprep.subr.bf16.mxu1 %v3021_v58 }
 0x4b5   :  { %3024 = vmatpush3.bf16.msra.mxu1 %v3021_v58 }
 0x4b6   :  { %3026 = vmatprep.subr.bf16.mxu1 %v3025_v19 }
 0x4b9   :  { %3028 = vmatpush3.bf16.msra.mxu1 %v3025_v19 }
 0x4ba   :  { %3062 = vmatprep.subr.bf16.mxu1 %v3061_v20 }
 0x57f   :  { %v2653_v31 = vpop.f32.mrb[22].mxu1 }
 0x580   :  { %v1015_v16 = vpop.f32.mrb[23].mxu1 }
 0x581   :  { %v3077_v22 = vpack.c.bf16 %v2653_v31, %v1015_v16  ;;  %2670 = vmatprep.mubr.msk.f32.mxu1 %vm161_vm1, %v1015_v16 }
 0x582   :  { %2671 = vmatmul.mubr.msk.f32.vlgmr.msra.gmra.mrb[24].mxu1 %vm161_vm1, %v2653_v31 }
 0x583   :  { %3064 = vmatpush3.bf16.msra.mxu1 %v3061_v20  ;;  %2724 = vmatprep.mubr.msk.f32.mxu1 %vm161_vm1, %v1015_v16 }
 0x584   :  { %3066 = vmatprep.subr.bf16.mxu1 %v3065_v15 }
 0x587   :  { %3068 = vmatpush3.bf16.msra.mxu1 %v3065_v15 }
 0x588   :  { %3070 = vmatprep.subr.bf16.mxu1 %v3069_v41 }
 0x58b   :  { %3072 = vmatpush3.bf16.msra.mxu1 %v3069_v41 }
 0x58c   :  { %3074 = vmatprep.subr.bf16.mxu1 %v3073_v35 }
 0x58f   :  { %3076 = vmatpush3.bf16.msra.mxu1 %v3073_v35 }
 0x590   :  { %3078 = vmatprep.subr.bf16.mxu1 %v3077_v22 }
 0x592   :  { %2725 = vmatmul.mubr.msk.f32.vlgmr.msra.gmra.mrb[26].mxu1 %vm161_vm1, %v2653_v31 }
 0x593   :  { %3080 = vmatpush3.bf16.msra.mxu1 %v3077_v22  ;;  %2731 = vmatprep.mubr.msk.f32.mxu1 %vm79_vm0, %v3363_v33 }
 0x596   :  { %2732 = vmatmul.mubr.msk.f32.vlgmr.msra.gmra.mrb[28].mxu1 %vm79_vm0, %v3368_v34 }
 0x597   :  { %2734 = vmatprep.mubr.msk.f32.mxu1 %vm79_vm0, %v3387_v38 }
 0x59a   :  { %2735 = vmatmul.mubr.msk.f32.gmra.mrb[30].mxu1 %vm79_vm0, %v3400_v39 }
 0x59b   :  { %2737 = vmatprep.mubr.msk.f32.mxu1 %vm79_vm0, %v3405_v40 }
 0x59e   :  { %2738 = vmatmul.mubr.msk.f32.gmra.mrb[32].mxu1 %vm79_vm0, %v3418_v42 }
 0x59f   :  { %2740 = vmatprep.mubr.msk.f32.mxu1 %vm79_vm0, %v3423_v43 }
 0x5a2   :  { %2741 = vmatmul.mubr.msk.f32.gmra.mrb[34].mxu1 %vm79_vm0, %v3436_v44 }
 0x5a3   :  { %2743 = vmatprep.mubr.msk.f32.mxu1 %vm79_vm0, %v3441_v45 }
 0x5a6   :  { %2744 = vmatmul.mubr.msk.f32.gmra.mrb[36].mxu1 %vm79_vm0, %v3454_v47 }
 0x5a7   :  { %2746 = vmatprep.mubr.msk.f32.mxu1 %vm79_vm0, %v3459_v48 }
 0x5aa   :  { %2747 = vmatmul.mubr.msk.f32.gmra.mrb[38].mxu1 %vm79_vm0, %v3472_v49 }
 0x5ab   :  { %2749 = vmatprep.mubr.msk.f32.mxu1 %vm79_vm0, %v3477_v50 }
 0x5ae   :  { %2750 = vmatmul.mubr.msk.f32.gmra.mrb[40].mxu1 %vm79_vm0, %v3490_v52 }
 0x5af   :  { %2752 = vmatprep.mubr.msk.f32.mxu1 %vm79_vm0, %v3495_v53 }
 0x5b2   :  { %2753 = vmatmul.mubr.msk.f32.gmra.mrb[42].mxu1 %vm79_vm0, %v3508_v54 }
 0x655   :  { %v2672_v33 = vpop.f32.mrb[24].mxu1 }
 0x656   :  { %v1096_v34 = vpop.f32.mrb[25].mxu1 }
 0x657   :  { %1105 = vxpose.xlu0.b32.start [1/2] (short) (narrow) %v1096_v34, 8 }
 0x65b   :  { %1106 = vxpose.xlu0.b32.end [2/2] (short) (narrow) %v2672_v33, 8 }
 0x665   :  { %v2726_v38 = vpop.f32.mrb[26].mxu1 }
 0x666   :  { %v1284_v39 = vpop.f32.mrb[27].mxu1 }
 0x669   :  { %v2733_v42 = vpop.f32.mrb[28].mxu1 }
 0x66a   :  { %v1537_v43 = vmul.f32 %v2733_v42, %v3551_v1  ;;  %v1457_v44 = vpop.f32.mrb[29].mxu1 }
 0x66b   :  { %v1536_v45 = vmul.f32 %v1457_v44, %v3556_v2 }
 0x66d   :  { %v2736_v47 = vpop.f32.mrb[30].mxu1  ;;  %v3081_v50 = vpack.c.bf16 %v1537_v43, %v1536_v45 }
 0x66e   :  { %v1539_v48 = vmul.f32 %v2736_v47, %v3561_v4  ;;  %v1467_v49 = vpop.f32.mrb[31].mxu1 }
 0x66f   :  { %v1538_v52 = vmul.f32 %v1467_v49, %v3572_v9  ;;  %3082 = vmatprep.subr.bf16.mxu1 %v3081_v50 }
 0x670   :  { %3084 = vmatpush3.bf16.msra.mxu1 %v3081_v50 }
 0x671   :  { %v2739_v53 = vpop.f32.mrb[32].mxu1  ;;  %v3085_v55 = vpack.c.bf16 %v1539_v48, %v1538_v52 }
 0x672   :  { %v1541_v54 = vmul.f32 %v2739_v53, %v3577_v10  ;;  %v1477_v51 = vpop.f32.mrb[33].mxu1 }
 0x673   :  { %v1540_v56 = vmul.f32 %v1477_v51, %v3587_v14  ;;  %3086 = vmatprep.subr.bf16.mxu1 %v3085_v55  ;;  %v1720_v51 = vld [vmem:[%s3969_s10 + $0x20] sm:$0xff] }
 0x674   :  { %3088 = vmatpush3.bf16.msra.mxu1 %v3085_v55  ;;  %v1721_v55 = vld [vmem:[%s3969_s10 + $0x28] sm:$0xff] }
 0x675   :  { %v2742_v57 = vpop.f32.mrb[34].mxu1  ;;  %v3089_v58 = vpack.c.bf16 %v1541_v54, %v1540_v56  ;;  %v3153_v56 = vpack.c.bf16 %v1721_v55, %v1720_v51 }
 0x676   :  { %v1543_v1 = vmul.f32 %v2742_v57, %v3594_v18  ;;  %v1487_v2 = vpop.f32.mrb[35].mxu1  ;;  %v1722_v57 = vld [vmem:[%s3969_s10 + $0x30] sm:$0xff] }
 0x677   :  { %v1542_v4 = vmul.f32 %v1487_v2, %v3601_v21  ;;  %3090 = vmatprep.subr.bf16.mxu1 %v3089_v58 }
 0x678   :  { %3092 = vmatpush3.bf16.msra.mxu1 %v3089_v58  ;;  %v1725_v58 = vld [vmem:[%s3970_s12] sm:$0xff] }
 0x679   :  { %v2745_v63 = vpop.f32.mrb[36].mxu1  ;;  %v3093_v19 = vpack.c.bf16 %v1543_v1, %v1542_v4  ;;  %v1723_v1 = vld [vmem:[%s3969_s10 + $0x38] sm:$0xff] }
 0x67a   :  { %v1545_v9 = vmul.f32 %v2745_v63, %v3612_v26  ;;  %v1497_v61 = vpop.f32.mrb[37].mxu1  ;;  %v3157_v2 = vpack.c.bf16 %v1723_v1, %v1722_v57 }
 0x67b   :  { %v1544_v10 = vmul.f32 %v1497_v61, %v3618_v29  ;;  %3094 = vmatprep.subr.bf16.mxu1 %v3093_v19 }
 0x67c   :  { %3096 = vmatpush3.bf16.msra.mxu1 %v3093_v19 }
 0x67d   :  { %v2748_v59 = vpop.f32.mrb[38].mxu1  ;;  %v3097_v20 = vpack.c.bf16 %v1545_v9, %v1544_v10  ;;  %v2231_v10 = vld [vmem:[%s3971_s9] ss:$0 sm:$0xff] }
 0x67e   :  { %v1547_v14 = vmul.f32 %v2748_v59, %v3661_v6  ;;  %v1507_v27 = vpop.f32.mrb[39].mxu1 }
 0x67f   :  { %v1546_v18 = vmul.f32 %v1507_v27, %v3666_v12  ;;  %3098 = vmatprep.subr.bf16.mxu1 %v3097_v20 }
 0x680   :  { %3100 = vmatpush3.bf16.msra.mxu1 %v3097_v20 }
 0x681   :  { %v3101_v62 = vpack.c.bf16 %v1547_v14, %v1546_v18  ;;  %v2751_v33 = vpop.f32.mrb[40].mxu1 }
 0x682   :  { %v1549_v34 = vmul.f32 %v2751_v33, %v3678_v23 }
 0x683   :  { %3102 = vmatprep.subr.bf16.mxu1 %v3101_v62 }
 0x684   :  { %3104 = vmatpush3.bf16.msra.mxu1 %v3101_v62 }
 0x6d7   :  { %v1121_v40 = vpop.trf.xlu0 }
 0x6d8   :  { %2706 = vmatmul.mubr.msk.f32.vlgmr.msra.gmra.mrb[6].mxu0 %vm79_vm0, %v1121_v40  ;;  %v1517_v40 = vpop.f32.mrb[41].mxu1 }
 0x6d9   :  { %v1548_v42 = vmul.f32 %v1517_v40, %v3683_v25 }
 0x7ab   :  { %v1207_v21 = vpop.f32.mrb[6].mxu0 }
 0x7ac   :  { %v1211_v26 = vmul.f32 %v1207_v21, %v3641_v11  ;;  %v2707_v29 = vpop.f32.mrb[7].mxu0 }
 0x7ae   :  { %v1212_v28 = vrot.slane %v1211_v26, 4 }
 0x7b0   :  { %v1213_v31 = vadd.f32 %v1212_v28, %v1211_v26  ;;  %v1724_v26 = vld [vmem:[%s3972_s11] sm:$0xff] }
 0x7b2   :  { %v1214_v6 = vrot.slane %v1213_v31, 2 }
 0x7b4   :  { %v1215_v16 = vadd.f32 %v1214_v6, %v1213_v31 }
 0x7b6   :  { %v1216_v15 = vrot.slane %v1215_v16, 1 }
 0x7b8   :  { %v1217_v22 = vadd.f32 %v1216_v15, %v1215_v16 }
 0x7ba   :  { %v1285_v36 = vadd.f32 %v1284_v39, %v1217_v22  ;;  %v1290_v12 = vadd.f32 %v2726_v38, %v1217_v22  ;;  %v3105_v39 = vpack.c.bf16 %v1549_v34, %v1548_v42  ;;  %v2754_v38 = vpop.f32.mrb[42].mxu1 }
 0x7bb   :  { %v1551_v43 = vmul.f32 %v2754_v38, %v3695_v60  ;;  %v1527_v44 = vpop.f32.mrb[43].mxu1 }
 0x7bc   :  { %vm1293_vm6 = vcmp.gt.f32.partialorder %v1285_v36, 0.0  ;;  %v1295_v37 = vmul.f32 0.2, %v1285_v36  ;;  %v1296_v41 = vmul.f32 0.2, %v1290_v12  ;;  %vm1294_vm7 = vcmp.gt.f32.partialorder %v1290_v12, 0.0  ;;  %3106 = vmatprep.subr.bf16.mxu1 %v3105_v39 }
 0x7bd   :  { %v1550_v45 = vmul.f32 %v1527_v44, %v3700_v5  ;;  %3108 = vmatpush3.bf16.msra.mxu1 %v3105_v39  ;;  %v3991_v5 = vld [vmem:[#allocation2_spill] sm:$0xff] }
 0x7be   :  { %v1297_v46 = vsel %vm1293_vm6, %v1285_v36, %v1295_v37  ;;  %v1298_v35 = vsel %vm1294_vm7, %v1290_v12, %v1296_v41  ;;  %v1922_v36 = vlaneseq }
 0x7bf   :  { %v1299_v32 = vadd.f32 %v1297_v46, %v3649_v30  ;;  %v1300_v11 = vadd.f32 %v1298_v35, %v3655_v0  ;;  %v3109_v47 = vpack.c.bf16 %v1551_v43, %v1550_v45 }
 0x7c0   :  { %v1923_v12 = vshrl.u32 %v1922_v36, 7 }
 0x7c1   :  { %1301 = vmax.xlane.f32.xlu1 %v1299_v32  ;;  %3110 = vmatprep.subr.bf16.mxu1 %v3109_v47 }
 0x7c2   :  { %3112 = vmatpush3.bf16.msra.mxu1 %v3109_v47  ;;  %v1924_v37 = vsub.s32 0, %v1923_v12 }
 0x7c3   :  { %3114 = vmatprep.subr.bf16.mxu1 %v3567_v7 }
 0x7c5   :  { %1303 = vmax.xlane.f32.xlu1 %v1300_v11 }
 0x84e   :  { %v1302_v48 = vpop.xlane.xlu1 %1301 }
 0x84f   :  { %v1305_v49 = vsub.f32 %v1299_v32, %v1302_v48 }
 0x851   :  { %v1307_v23 = vmul.f32 1.442695, %v1305_v49 }
 0x852   :  { %v1304_v50 = vpop.xlane.xlu1 %1303 }
 0x853   :  { %3176 = vpow2.f32 %v1307_v23  ;;  %v1306_v25 = vsub.f32 %v1300_v11, %v1304_v50 }
 0x855   :  { %v1309_v52 = vmul.f32 1.442695, %v1306_v25 }
 0x857   :  { %3178 = vpow2.f32 %v1309_v52 }
 0x85d   :  { %v3177_v53 = vpop.eup %3176 }
 0x85e   :  { %2787 = vmatprep.mubr.f32.mxu1 %v3177_v53 }
 0x861   :  { %v3179_v60 = vpop.eup %3178 }
 0x862   :  { %2788 = vmatmul.mubr.f32.vlgmr.msra.gmra.mrb[44].mxu1 %v3179_v60 }
 0x863   :  { %3116 = vmatpush3.bf16.msra.mxu1 %v3567_v7  ;;  %2822 = vmatprep.mubr.f32.mxu1 %v3177_v53  ;;  %v3992_v7 = vld [vmem:[#allocation3_spill] sm:$0xff] }
 0x864   :  { %3118 = vmatprep.subr.bf16.mxu1 %v3582_v13 }
 0x867   :  { %3120 = vmatpush3.bf16.msra.mxu1 %v3582_v13  ;;  %v1716_v13 = vld [vmem:[%s3969_s10] sm:$0xff] }
 0x868   :  { %3122 = vmatprep.subr.bf16.mxu1 %v3606_v24 }
 0x86b   :  { %3124 = vmatpush3.bf16.msra.mxu1 %v3606_v24  ;;  %v1717_v24 = vld [vmem:[%s3969_s10 + $0x8] sm:$0xff] }
 0x86c   :  { %3126 = vmatprep.subr.bf16.mxu1 %v3625_v3 }
 0x86f   :  { %3128 = vmatpush3.bf16.msra.mxu1 %v3625_v3  ;;  %v3145_v3 = vpack.c.bf16 %v1717_v24, %v1716_v13  ;;  %v2240_v13 = vld [vmem:[%s3973_s13] ss:$0 sm:$0xff] }
 0x870   :  { %3130 = vmatprep.subr.bf16.mxu1 %v3632_v8 }
 0x871   :  { %3146 = vmatprep.subr.bf16.mxu0 %v3145_v3 }
 0x872   :  { %3148 = vmatpush3.bf16.msra.mxu0 %v3145_v3 }
 0x873   :  { %3132 = vmatpush3.bf16.msra.mxu1 %v3632_v8  ;;  %v1718_v8 = vld [vmem:[%s3969_s10 + $0x10] sm:$0xff] }
 0x874   :  { %3134 = vmatprep.subr.bf16.mxu1 %v3991_v5 }
 0x877   :  { %3136 = vmatpush3.bf16.msra.mxu1 %v3991_v5 }
 0x878   :  { %3138 = vmatprep.subr.bf16.mxu1 %v3992_v7 }
 0x87b   :  { %3140 = vmatpush3.bf16.msra.mxu1 %v3992_v7 }
 0x87c   :  { %3142 = vmatprep.subr.bf16.mxu1 %v3705_v17 }
 0x87f   :  { %3144 = vmatpush3.bf16.msra.mxu1 %v3705_v17  ;;  %v1719_v17 = vld [vmem:[%s3969_s10 + $0x18] sm:$0xff] }
 0x880   :  { %v3149_v54 = vpack.c.bf16 %v1719_v17, %v1718_v8 }
 0x882   :  { %2823 = vmatmul.mubr.f32.vlgmr.msra.gmra.mrb[46].mxu1 %v3179_v60  ;;  %3150 = vmatprep.subr.bf16.mxu0 %v3149_v54 }
 0x883   :  { %3152 = vmatpush3.bf16.msra.mxu0 %v3149_v54 }
 0x884   :  { %3154 = vmatprep.subr.bf16.mxu0 %v3153_v56 }
 0x887   :  { %3156 = vmatpush3.bf16.msra.mxu0 %v3153_v56 }
 0x888   :  { %3158 = vmatprep.subr.bf16.mxu0 %v3157_v2 }
 0x88b   :  { %3160 = vmatpush3.bf16.msra.mxu0 %v3157_v2 }
 0x88c   :  { %2844 = vmatprep.subr.mxu0 %v1725_v58 }
 0x935   :  { %v2789_v4 = vpop.f32.mrb[44].mxu1 }
 0x936   :  { %v1618_v63 = vpop.f32.mrb[45].mxu1 }
 0x955   :  { %v2824_v9 = vpop.f32.mrb[46].mxu1 }
 0x956   :  { %3180 = vrcp.f32 %v2824_v9  ;;  %v1693_v61 = vpop.f32.mrb[47].mxu1 }
 0x957   :  { %3182 = vrcp.f32 %v1693_v61 }
 0x960   :  { %v3181_v19 = vpop.eup %3180 }
 0x961   :  { %v3183_v59 = vpop.eup %3182  ;;  %v1705_v14 = vmul.f32 %v3181_v19, %v2789_v4 }
 0x962   :  { %v1704_v27 = vmul.f32 %v3183_v59, %v1618_v63 }
 0x963   :  { %v1713_v20 = vadd.f32 %v2231_v10, %v1705_v14 }
 0x964   :  { %v1712_v18 = vadd.f32 %v2231_v10, %v1704_v27 }
 0x965   :  { %v1715_v21 = vmax.f32 %v1713_v20, 0.0 }
 0x966   :  { %v1714_v62 = vmax.f32 %v1712_v18, 0.0 }
 0x968   :  { %2841 = vmatprep.mubr.msk.f32.mxu0 %vm161_vm1, %v1714_v62 }
 0x969   :  { %2842 = vmatmul.mubr.msk.f32.vlgmr.msra.gmra.mrb[8].mxu0 %vm161_vm1, %v1715_v21 }
 0x96a   :  { %2845 = vmatpush3.msra.mxu0 %v1725_v58 }
 0x96b   :  { %2849 = vmatprep.subr.mxu0 %v1724_v26 }
 0xa3c   :  { %v2843_v29 = vpop.f32.mrb[8].mxu0 }
 0xa3d   :  { %v1799_v28 = vpop.f32.mrb[9].mxu0 }
 0xa3e   :  { %v3161_v31 = vpack.c.bf16 %v2843_v29, %v1799_v28  ;;  %2846 = vmatprep.mubr.msk.f32.mxu0 %vm1808_vm8, %v1799_v28 }
 0xa3f   :  { %2847 = vmatmul.mubr.msk.f32.vlgmr.msra.gmra.mrb[10].mxu0 %vm1808_vm8, %v2843_v29 }
 0xa40   :  { %2851 = vmatprep.mubr.msk.f32.mxu0 %vm1808_vm8, %v1799_v28  ;;  %3162 = vmatprep.subr.bf16.mxu1 %v3161_v31 }
 0xa41   :  { %3164 = vmatpush3.bf16.msra.mxu1 %v3161_v31  ;;  %2850 = vmatpush3.msra.mxu0 %v1724_v26 }
 0xa43   :  { %2852 = vmatmul.mubr.msk.f32.vlgmr.msra.gmra.mrb[12].mxu0 %vm1808_vm8, %v2843_v29 }
 0xb12   :  { %v2848_v6 = vpop.f32.mrb[10].mxu0 }
 0xb13   :  { %v1881_v16 = vpop.f32.mrb[11].mxu0 }
 0xb14   :  { %1890 = vxpose.xlu0.b32.start [1/2] (short) (narrow) %v1881_v16, 8 }
 0xb16   :  { %v2853_v15 = vpop.f32.mrb[12].mxu0 }
 0xb17   :  { %v1992_v22 = vpop.f32.mrb[13].mxu0 }
 0xb18   :  { %1891 = vxpose.xlu0.b32.end [2/2] (short) (narrow) %v2848_v6, 8 }
 0xb94   :  { %v1906_v41 = vpop.trf.xlu0 }
 0xb95   :  { %v1925_v46 = vrot.slane %v1906_v41, %v1924_v37 }
 0xb97   :  { %v1993_v32 = vadd.f32 %v1992_v22, %v1925_v46  ;;  %v1998_v35 = vadd.f32 %v2853_v15, %v1925_v46 }
 0xb99   :  { %v2003_v11 = vmul.f32 0.2, %v1993_v32  ;;  %v2004_v33 = vmul.f32 0.2, %v1998_v35  ;;  %vm2001_vm9 = vcmp.gt.f32.partialorder %v1993_v32, 0.0  ;;  %vm2002_vm10 = vcmp.gt.f32.partialorder %v1998_v35, 0.0 }
 0xb9b   :  { %v2005_v34 = vsel %vm2001_vm9, %v1993_v32, %v2003_v11  ;;  %v2006_v40 = vsel %vm2002_vm10, %v1998_v35, %v2004_v33 }
 0xb9c   :  { %v2007_v42 = vadd.f32 %v2005_v34, %v3649_v30  ;;  %v2008_v38 = vadd.f32 %v2006_v40, %v3655_v0 }
 0xb9e   :  { %v2009_v39 = vsel %vm79_vm0, %v2007_v42, -inf  ;;  %v2012_v43 = vsel %vm79_vm0, %v2008_v38, -inf }
 0xb9f   :  { %2010 = vmax.xlane.f32.xlu1 %v2009_v39 }
 0xba3   :  { %2013 = vmax.xlane.f32.xlu1 %v2012_v43 }
 0xc2c   :  { %v2011_v44 = vpop.xlane.xlu1 %2010 }
 0xc2d   :  { %v2015_v45 = vsub.f32 %v2007_v42, %v2011_v44 }
 0xc2f   :  { %v2017_v47 = vmul.f32 1.442695, %v2015_v45 }
 0xc30   :  { %v2014_v48 = vpop.xlane.xlu1 %2013 }
 0xc31   :  { %3184 = vpow2.f32 %v2017_v47  ;;  %v2016_v49 = vsub.f32 %v2008_v38, %v2014_v48 }
 0xc33   :  { %v2019_v23 = vmul.f32 1.442695, %v2016_v49 }
 0xc35   :  { %3186 = vpow2.f32 %v2019_v23 }
 0xc3b   :  { %v3185_v50 = vpop.eup %3184 }
 0xc3c   :  { %2858 = vmatprep.mubr.msk.f32.mxu1 %vm79_vm0, %v3185_v50  ;;  %v2102_v30 = vsel %vm79_vm0, %v3185_v50, 0.0 }
 0xc3d   :  { %2103 = vadd.xlane.f32.xlu0 %v2102_v30 }
 0xc3f   :  { %v3187_v25 = vpop.eup %3186 }
 0xc40   :  { %2859 = vmatmul.mubr.msk.f32.vlgmr.msra.gmra.mrb[48].mxu1 %vm79_vm0, %v3187_v25  ;;  %v2105_v0 = vsel %vm79_vm0, %v3187_v25, 0.0 }
 0xc41   :  { %2106 = vadd.xlane.f32.xlu1 %v2105_v0 }
 0xcca   :  { %v2104_v52 = vpop.xlane.xlu0 %2103 }
 0xccb   :  { %3188 = vrcp.f32 %v2104_v52 }
 0xcce   :  { %v2107_v53 = vpop.xlane.xlu1 %2106 }
 0xccf   :  { %3190 = vrcp.f32 %v2107_v53 }
 0xcd5   :  { %v3189_v60 = vpop.eup %3188 }
 0xcd9   :  { %v3191_v7 = vpop.eup %3190 }
 0xd13   :  { %v2860_v5 = vpop.f32.mrb[48].mxu1 }
 0xd14   :  { %v2093_v24 = vpop.f32.mrb[49].mxu1  ;;  %v2111_v3 = vmul.f32 %v3191_v7, %v2860_v5 }
 0xd15   :  { %v2110_v8 = vmul.f32 %v3189_v60, %v2093_v24 }
 0xd16   :  { %v2119_v54 = vadd.f32 %v2240_v13, %v2111_v3 }
 0xd17   :  { %v2118_v17 = vadd.f32 %v2240_v13, %v2110_v8 }
 0xd18   :  { %v2123_v55 = vsel %vm1808_vm8, %v2119_v54, -inf }
 0xd19   :  { %v2120_v51 = vsel %vm1808_vm8, %v2118_v17, -inf }
 0xd1a   :  { %2121 = vmax.xlane.f32.xlu1 %v2120_v51 }
 0xd1e   :  { %2124 = vmax.xlane.f32.xlu1 %v2123_v55 }
 0xda7   :  { %v2122_v56 = vpop.xlane.xlu1 %2121 }
 0xda8   :  { %v2126_v57 = vsub.f32 %v2118_v17, %v2122_v56 }
 0xdaa   :  { %v2128_v1 = vmul.f32 1.442695, %v2126_v57 }
 0xdab   :  { %v2125_v2 = vpop.xlane.xlu1 %2124 }
 0xdac   :  { %3192 = vpow2.f32 %v2128_v1  ;;  %v2127_v58 = vsub.f32 %v2119_v54, %v2125_v2 }
 0xdae   :  { %v2130_v4 = vmul.f32 1.442695, %v2127_v58 }
 0xdb0   :  { %3194 = vpow2.f32 %v2130_v4 }
 0xdb6   :  { %v3193_v63 = vpop.eup %3192 }
 0xdb7   :  { %v2132_v9 = vsel %vm1808_vm8, %v3193_v63, 0.0 }
 0xdb8   :  { %2133 = vadd.xlane.f32.xlu1 %v2132_v9 }
 0xdba   :  { %v3195_v61 = vpop.eup %3194 }
 0xdbb   :  { %v2135_v19 = vsel %vm1808_vm8, %v3195_v61, 0.0 }
 0xdbc   :  { %2136 = vadd.xlane.f32.xlu1 %v2135_v19 }
 0xe45   :  { %v2134_v10 = vpop.xlane.xlu1 %2133 }
 0xe46   :  { %3196 = vlog2.f32 %v2134_v10 }
 0xe49   :  { %v2137_v59 = vpop.xlane.xlu1 %2136 }
 0xe4a   :  { %3198 = vlog2.f32 %v2137_v59 }
 0xe50   :  { %v3197_v14 = vpop.eup %3196 }
 0xe51   :  { %v2139_v27 = vmul.f32 0.6931472, %v3197_v14 }
 0xe53   :  { %v2142_v20 = vadd.f32 %v2139_v27, %v2122_v56 }
 0xe54   :  { %v3199_v18 = vpop.eup %3198 }
 0xe55   :  { %v2144_v62 = vsub.f32 %v2118_v17, %v2142_v20  ;;  %v2141_v21 = vmul.f32 0.6931472, %v3199_v18 }
 0xe57   :  { %2146 = vst.msk [vmem:[%s3974_s17] sm:$0xff] %vm1808_vm8, %v2144_v62  ;;  %v2143_v26 = vadd.f32 %v2141_v21, %v2125_v2 }
 0xe59   :  { %v2145_v29 = vsub.f32 %v2119_v54, %v2143_v26 }
 0xe5b   :  { %2147 = vst.msk [vmem:[%s3974_s17 + $0x8] sm:$0xff] %vm1808_vm8, %v2145_v29 }

</bundles_post_ra>
